<compile_context>
chip_gen: v6e
topology: v6e:2x2x1
jax: 0.10.0
libtpu: 0.0.40
codegen_flags: <defaults>
</compile_context>

<pallas_src>
import functools

import jax
import jax.numpy as jnp
from jax import lax
from jax.experimental import pallas as pl
from jax.experimental.pallas import tpu as pltpu


def _mhsa_kernel(x_ref, wqkv_ref, wproj_ref, bproj_ref, out_ref, attn_ref,
                 xb_scr, acc_scr, *, num_heads, head_group, scale):
    g = pl.program_id(1)
    num_g = pl.num_programs(1)
    _, N, C = x_ref.shape
    hd = C // num_heads
    Hg = head_group
    gc = Hg * hd                                    # channels owned by this head group

    @pl.when(g == 0)
    def _():
        # Cache the bf16 cast of x once per batch element; zero the projection
        # accumulator (output block stays resident across the group axis).
        xb_scr[...] = x_ref[0].astype(jnp.bfloat16)          # (N, C)
        acc_scr[...] = jnp.zeros_like(acc_scr)               # (C, N) f32

    # --- qkv projection for this head group, transposed orientation ----------
    # qkv_t[r, n] = sum_c W[r, c] * x[n, c]   (contract last dims -> no transpose)
    w = wqkv_ref[...].reshape(3 * gc, C)                      # bf16 (3*gc, C)
    qkv_t = lax.dot_general(w, xb_scr[...], (((1,), (1,)), ((), ())),
                            preferred_element_type=jnp.float32)   # (3*gc, N) f32
    # Rows ordered (qkv, head_in_group, head_dim): head split is a layout-free
    # major-dim slice + reshape.  Scale is folded into q before the bf16 cast.
    q_t = (qkv_t[:gc] * scale).astype(jnp.bfloat16).reshape(Hg, hd, N)
    k_t = qkv_t[gc:2 * gc].astype(jnp.bfloat16).reshape(Hg, hd, N)
    v_t = qkv_t[2 * gc:].astype(jnp.bfloat16).reshape(Hg, hd, N)

    # --- scores: contract over head_dim (axis 1 of both); bf16 operands ------
    # s[h, q, k] = sum_d q_t[h, d, q] * k_t[h, d, k]
    s = lax.dot_general(q_t, k_t, (((1,), (1,)), ((0,), (0,))),
                        preferred_element_type=jnp.float32)       # (Hg, N, N) f32

    # --- softmax over keys (f32 max/sum, bf16 probabilities) -----------------
    s = s - jnp.max(s, axis=-1, keepdims=True)
    e = jnp.exp(s)
    inv = pl.reciprocal(jnp.sum(e, axis=-1, keepdims=True), approx=True)
    a = (e * inv).astype(jnp.bfloat16)                            # (Hg, N, N) bf16
    attn_ref[0] = a.astype(attn_ref.dtype)                        # tiled bf16 store
    # attn_drop: identity (p = 0.0 / inference)

    # --- context: ctx_t[h, d, q] = sum_k v_t[h, d, k] * a[h, q, k] ------------
    ctx_t = lax.dot_general(v_t, a, (((2,), (2,)), ((0,), (0,))),
                            preferred_element_type=jnp.float32)   # (Hg, hd, N)
    ctx2 = ctx_t.reshape(gc, N).astype(jnp.bfloat16)              # layout-free merge

    # --- partial output projection, accumulated over head groups -------------
    # acc[co, n] += sum_r wp[r, co] * ctx2[r, n]
    wp = wproj_ref[...].reshape(gc, C)                            # bf16 (gc, C_out)
    acc_scr[...] += lax.dot_general(wp, ctx2, (((0,), (0,)), ((), ())),
                                    preferred_element_type=jnp.float32)

    @pl.when(g == num_g - 1)
    def _():
        out_ref[0] = (acc_scr[...].T + bproj_ref[...]).astype(out_ref.dtype)
        # proj_drop: identity (p = 0.0 / inference)


def mhsa_forward(x, wqkv, wproj, bproj, *, num_heads, head_group=None,
                 attn_dtype=jnp.bfloat16):
    """Fused multi-head self-attention.

    x:     (B, N, C) f32
    wqkv:  (3C, C)   torch qkv.weight layout (rows ordered (3, heads, head_dim))
    wproj: (C, C)    torch proj.weight layout
    bproj: (1, C)    proj bias
    Returns (out (B, N, C) f32, attn (B, H, N, N) attn_dtype).
    """
    B, N, C = x.shape
    H = num_heads
    hd = C // H
    if head_group is None:
        head_group = min(H, 4)
    assert H % head_group == 0, "num_heads must be divisible by head_group"
    G = H // head_group
    scale = hd ** -0.5

    # One-time weight layout plumbing (outside the kernel):
    #   wqkv  -> (3, H, hd, C)            (pure reshape)
    #   wproj -> (H, hd, C_out)           (group the proj input channels by head)
    wqkv_r = wqkv.reshape(3, H, hd, C).astype(jnp.bfloat16)
    wproj_r = wproj.reshape(C, H, hd).transpose(1, 2, 0).astype(jnp.bfloat16)
    bproj_r = bproj.reshape(1, C).astype(jnp.float32)

    kernel = functools.partial(_mhsa_kernel, num_heads=H,
                               head_group=head_group, scale=scale)
    return pl.pallas_call(
        kernel,
        out_shape=(jax.ShapeDtypeStruct((B, N, C), jnp.float32),
                   jax.ShapeDtypeStruct((B, H, N, N), attn_dtype)),
        grid=(B, G),
        in_specs=[
            pl.BlockSpec((1, N, C), lambda b, g: (b, 0, 0)),            # x (resident over g)
            pl.BlockSpec((3, head_group, hd, C), lambda b, g: (0, g, 0, 0)),
            pl.BlockSpec((head_group, hd, C), lambda b, g: (g, 0, 0)),
            pl.BlockSpec((1, C), lambda b, g: (0, 0)),
        ],
        out_specs=(
            pl.BlockSpec((1, N, C), lambda b, g: (b, 0, 0)),            # written at last g
            pl.BlockSpec((1, head_group, N, N), lambda b, g: (b, g, 0, 0)),
        ),
        scratch_shapes=[
            pltpu.VMEM((N, C), jnp.bfloat16),   # cached bf16 cast of x
            pltpu.VMEM((C, N), jnp.float32),    # output-projection accumulator
        ],
        compiler_params=pltpu.CompilerParams(
            # batch shards across TensorCores (v7x); head-group axis is a
            # sequential accumulation axis.
            dimension_semantics=("parallel", "arbitrary")),
    )(x, wqkv_r, wproj_r, bproj_r)


def mhsa_reference(x, wqkv, wproj, bproj, *, num_heads):
    """Pure-JAX mirror of the PyTorch forward (correctness reference)."""
    B, N, C = x.shape
    hd = C // num_heads
    scale = hd ** -0.5
    qkv = x @ wqkv.astype(jnp.float32).T                       # (B, N, 3C)
    qkv = qkv.reshape(B, N, 3, num_heads, hd).transpose(2, 0, 3, 1, 4)
    q, k, v = qkv[0], qkv[1], qkv[2]                           # (B, H, N, hd)
    attn = jax.nn.softmax((q @ jnp.swapaxes(k, -1, -2)) * scale, axis=-1)
    out = (attn @ v).transpose(0, 2, 1, 3).reshape(B, N, C)
    out = out @ wproj.astype(jnp.float32).T + bproj.reshape(1, C)
    return out, attn


if __name__ == "__main__":
    B, N, C, H = 2, 128, 128, 8          # dim=128, num_heads=8 (module default)
    key = jax.random.PRNGKey(0)
    kx, kq, kp, kb = jax.random.split(key, 4)

    x = jax.random.normal(kx, (B, N, C), jnp.float32)
    wqkv = (0.02 * jax.random.normal(kq, (3 * C, C), jnp.float32)).astype(jnp.bfloat16)
    wproj = (0.02 * jax.random.normal(kp, (C, C), jnp.float32)).astype(jnp.bfloat16)
    bproj = 0.02 * jax.random.normal(kb, (1, C), jnp.float32)

    out, attn = jax.block_until_ready(
        mhsa_forward(x, wqkv, wproj, bproj, num_heads=H))
    assert out.shape == (B, N, C), out.shape
    assert attn.shape == (B, H, N, N), attn.shape

    ref_out, ref_attn = mhsa_reference(x, wqkv, wproj, bproj, num_heads=H)
    assert jnp.allclose(attn.astype(jnp.float32), ref_attn,
                        rtol=2e-2, atol=2e-2), "attn mismatch"
    assert jnp.allclose(out, ref_out, rtol=2e-2, atol=2e-2), "output mismatch"

    print("KERNEL_OK")
</pallas_src>

<mosaic_0001>
module attributes {stable_mosaic.version = 11 : i64} {
  func.func @_mhsa_kernel(%arg0: i32, %arg1: i32, %arg2: memref<1x128x128xf32, #tpu.memory_space<vmem>>, %arg3: memref<3x4x16x128xbf16, #tpu.memory_space<vmem>>, %arg4: memref<4x16x128xbf16, #tpu.memory_space<vmem>>, %arg5: memref<1x128xf32, #tpu.memory_space<vmem>>, %arg6: memref<1x128x128xf32, #tpu.memory_space<vmem>>, %arg7: memref<1x4x128x128xbf16, #tpu.memory_space<vmem>>, %arg8: memref<128x128xbf16, #tpu.memory_space<vmem>>, %arg9: memref<128x128xf32, #tpu.memory_space<vmem>>) attributes {dimension_semantics = [#tpu.dimension_semantics<parallel>, #tpu.dimension_semantics<arbitrary>], iteration_bounds = array<i64: 2, 2>, scalar_prefetch = 0 : i64, scratch_operands = 2 : i64, tpu.core_type = #tpu.core_type<tc>, window_params = [{transform_indices = @transform_0, window_bounds = array<i64: 1, 128, 128>}, {transform_indices = @transform_1, window_bounds = array<i64: 3, 4, 16, 128>}, {transform_indices = @transform_2, window_bounds = array<i64: 4, 16, 128>}, {pipeline_mode = #tpu.pipeline_mode<synchronous>, transform_indices = @transform_3, window_bounds = array<i64: 1, 128>}, {transform_indices = @transform_4, window_bounds = array<i64: 1, 128, 128>}, {transform_indices = @transform_5, window_bounds = array<i64: 1, 4, 128, 128>}]} {
    %c0_i32 = arith.constant 0 : i32
    %0 = arith.cmpi eq, %arg1, %c0_i32 : i32
    %1 = arith.extui %0 : i1 to i32
    %c0_i32_0 = arith.constant 0 : i32
    %2 = arith.cmpi ne, %1, %c0_i32_0 : i32
    scf.if %2 {
      %c0_24 = arith.constant 0 : index
      %c0_25 = arith.constant 0 : index
      %c0_26 = arith.constant 0 : index
      %45 = vector.load %arg2[%c0_24, %c0_25, %c0_26] : memref<1x128x128xf32, #tpu.memory_space<vmem>>, vector<1x128x128xf32>
      %46 = vector.shape_cast %45 : vector<1x128x128xf32> to vector<128x128xf32>
      %47 = arith.truncf %46 : vector<128x128xf32> to vector<128x128xbf16>
      %c0_27 = arith.constant 0 : index
      %c0_28 = arith.constant 0 : index
      %48 = vector.load %arg8[%c0_27, %c0_28] : memref<128x128xbf16, #tpu.memory_space<vmem>>, vector<128x128xbf16>
      tpu.vector_store %arg8[%c0_27, %c0_28], %47 {strides = array<i32>} : memref<128x128xbf16, #tpu.memory_space<vmem>>, vector<128x128xbf16>,
      %cst_29 = arith.constant 0.000000e+00 : f32
      %49 = vector.broadcast %cst_29 : f32 to vector<128x128xf32>
      %c0_30 = arith.constant 0 : index
      %c0_31 = arith.constant 0 : index
      %50 = vector.load %arg9[%c0_30, %c0_31] : memref<128x128xf32, #tpu.memory_space<vmem>>, vector<128x128xf32>
      tpu.vector_store %arg9[%c0_30, %c0_31], %49 {strides = array<i32>} : memref<128x128xf32, #tpu.memory_space<vmem>>, vector<128x128xf32>,
    } else {
    }
    %c0 = arith.constant 0 : index
    %c0_1 = arith.constant 0 : index
    %c0_2 = arith.constant 0 : index
    %c0_3 = arith.constant 0 : index
    %3 = vector.load %arg3[%c0, %c0_1, %c0_2, %c0_3] : memref<3x4x16x128xbf16, #tpu.memory_space<vmem>>, vector<3x4x16x128xbf16>
    %4 = vector.shape_cast %3 : vector<3x4x16x128xbf16> to vector<192x128xbf16>
    %c0_4 = arith.constant 0 : index
    %c0_5 = arith.constant 0 : index
    %5 = vector.load %arg8[%c0_4, %c0_5] : memref<128x128xbf16, #tpu.memory_space<vmem>>, vector<128x128xbf16>
    %cst = arith.constant dense<0.000000e+00> : vector<192x128xf32>
    %6 = tpu.matmul %4, %5, %cst {dimension_numbers = #tpu.dot_dimension_numbers<[1], [1], [0], [0], [0, 0, 1, 0], [], []>} : vector<192x128xbf16>, vector<128x128xbf16>, vector<192x128xf32> -> vector<192x128xf32>
    %7 = vector.extract_strided_slice %6 {offsets = [0, 0], sizes = [64, 128], strides = [1, 1]} : vector<192x128xf32> to vector<64x128xf32>
    %cst_6 = arith.constant 2.500000e-01 : f32
    %8 = vector.broadcast %cst_6 : f32 to vector<64x128xf32>
    %9 = arith.mulf %7, %8 : vector<64x128xf32>
    %10 = arith.truncf %9 : vector<64x128xf32> to vector<64x128xbf16>
    %11 = vector.shape_cast %10 : vector<64x128xbf16> to vector<4x16x128xbf16>
    %12 = vector.extract_strided_slice %6 {offsets = [64, 0], sizes = [64, 128], strides = [1, 1]} : vector<192x128xf32> to vector<64x128xf32>
    %13 = arith.truncf %12 : vector<64x128xf32> to vector<64x128xbf16>
    %14 = vector.shape_cast %13 : vector<64x128xbf16> to vector<4x16x128xbf16>
    %15 = vector.extract_strided_slice %6 {offsets = [128, 0], sizes = [64, 128], strides = [1, 1]} : vector<192x128xf32> to vector<64x128xf32>
    %16 = arith.truncf %15 : vector<64x128xf32> to vector<64x128xbf16>
    %17 = vector.shape_cast %16 : vector<64x128xbf16> to vector<4x16x128xbf16>
    %cst_7 = arith.constant dense<0.000000e+00> : vector<4x128x128xf32>
    %18 = tpu.matmul %11, %14, %cst_7 {dimension_numbers = #tpu.dot_dimension_numbers<[1], [1], [2], [2], [0, 0, 0, 2, 1, 2], [0], [0]>} : vector<4x16x128xbf16>, vector<4x16x128xbf16>, vector<4x128x128xf32> -> vector<4x128x128xf32>
    %cst_8 = arith.constant dense<0xFF800000> : vector<4x128xf32>
    %19 = vector.multi_reduction <maximumf>, %18, %cst_8 [2] : vector<4x128x128xf32> to vector<4x128xf32>
    %20 = vector.shape_cast %19 : vector<4x128xf32> to vector<4x128x1xf32>
    %21 = vector.broadcast %20 : vector<4x128x1xf32> to vector<4x128x128xf32>
    %22 = arith.subf %18, %21 : vector<4x128x128xf32>
    %23 = math.exp %22 : vector<4x128x128xf32>
    %cst_9 = arith.constant dense<0.000000e+00> : vector<4x128xf32>
    %24 = vector.multi_reduction <add>, %23, %cst_9 [2] : vector<4x128x128xf32> to vector<4x128xf32>
    %25 = vector.shape_cast %24 : vector<4x128xf32> to vector<4x128x1xf32>
    %26 = tpu.reciprocal %25 {approx = true} : vector<4x128x1xf32> -> vector<4x128x1xf32>
    %27 = vector.broadcast %26 : vector<4x128x1xf32> to vector<4x128x128xf32>
    %28 = arith.mulf %23, %27 : vector<4x128x128xf32>
    %29 = arith.truncf %28 : vector<4x128x128xf32> to vector<4x128x128xbf16>
    %c0_10 = arith.constant 0 : index
    %c0_11 = arith.constant 0 : index
    %c0_12 = arith.constant 0 : index
    %c0_13 = arith.constant 0 : index
    %30 = vector.load %arg7[%c0_10, %c0_11, %c0_12, %c0_13] : memref<1x4x128x128xbf16, #tpu.memory_space<vmem>>, vector<1x4x128x128xbf16>
    %31 = vector.shape_cast %30 : vector<1x4x128x128xbf16> to vector<4x128x128xbf16>
    %32 = vector.shape_cast %29 : vector<4x128x128xbf16> to vector<1x4x128x128xbf16>
    tpu.vector_store %arg7[%c0_10, %c0_11, %c0_12, %c0_13], %32 {strides = array<i32>} : memref<1x4x128x128xbf16, #tpu.memory_space<vmem>>, vector<1x4x128x128xbf16>,
    %cst_14 = arith.constant dense<0.000000e+00> : vector<4x16x128xf32>
    %33 = tpu.matmul %17, %29, %cst_14 {dimension_numbers = #tpu.dot_dimension_numbers<[2], [2], [1], [1], [0, 0, 0, 1, 1, 1], [0], [0]>} : vector<4x16x128xbf16>, vector<4x128x128xbf16>, vector<4x16x128xf32> -> vector<4x16x128xf32>
    %34 = vector.shape_cast %33 : vector<4x16x128xf32> to vector<64x128xf32>
    %35 = arith.truncf %34 : vector<64x128xf32> to vector<64x128xbf16>
    %c0_15 = arith.constant 0 : index
    %c0_16 = arith.constant 0 : index
    %c0_17 = arith.constant 0 : index
    %36 = vector.load %arg4[%c0_15, %c0_16, %c0_17] : memref<4x16x128xbf16, #tpu.memory_space<vmem>>, vector<4x16x128xbf16>
    %37 = vector.shape_cast %36 : vector<4x16x128xbf16> to vector<64x128xbf16>
    %c0_18 = arith.constant 0 : index
    %c0_19 = arith.constant 0 : index
    %38 = vector.load %arg9[%c0_18, %c0_19] : memref<128x128xf32, #tpu.memory_space<vmem>>, vector<128x128xf32>
    %cst_20 = arith.constant dense<0.000000e+00> : vector<128x128xf32>
    %39 = tpu.matmul %37, %35, %cst_20 {dimension_numbers = #tpu.dot_dimension_numbers<[0], [0], [1], [1], [0, 1, 1, 1], [], []>} : vector<64x128xbf16>, vector<64x128xbf16>, vector<128x128xf32> -> vector<128x128xf32>
    %40 = arith.addf %38, %39 : vector<128x128xf32>
    %c0_21 = arith.constant 0 : index
    %c0_22 = arith.constant 0 : index
    %41 = vector.load %arg9[%c0_21, %c0_22] : memref<128x128xf32, #tpu.memory_space<vmem>>, vector<128x128xf32>
    tpu.vector_store %arg9[%c0_21, %c0_22], %40 {strides = array<i32>} : memref<128x128xf32, #tpu.memory_space<vmem>>, vector<128x128xf32>,
    %c1_i32 = arith.constant 1 : i32
    %42 = arith.cmpi eq, %arg1, %c1_i32 : i32
    %43 = arith.extui %42 : i1 to i32
    %c0_i32_23 = arith.constant 0 : i32
    %44 = arith.cmpi ne, %43, %c0_i32_23 : i32
    scf.if %44 {
      %c0_24 = arith.constant 0 : index
      %c0_25 = arith.constant 0 : index
      %45 = vector.load %arg9[%c0_24, %c0_25] : memref<128x128xf32, #tpu.memory_space<vmem>>, vector<128x128xf32>
      %46 = tpu.transpose %45, [1, 0] : vector<128x128xf32> -> vector<128x128xf32>
      %c0_26 = arith.constant 0 : index
      %c0_27 = arith.constant 0 : index
      %47 = vector.load %arg5[%c0_26, %c0_27] : memref<1x128xf32, #tpu.memory_space<vmem>>, vector<1x128xf32>
      %48 = vector.broadcast %47 : vector<1x128xf32> to vector<128x128xf32>
      %49 = arith.addf %46, %48 : vector<128x128xf32>
      %c0_28 = arith.constant 0 : index
      %c0_29 = arith.constant 0 : index
      %c0_30 = arith.constant 0 : index
      %50 = vector.load %arg6[%c0_28, %c0_29, %c0_30] : memref<1x128x128xf32, #tpu.memory_space<vmem>>, vector<1x128x128xf32>
      %51 = vector.shape_cast %50 : vector<1x128x128xf32> to vector<128x128xf32>
      %52 = vector.shape_cast %49 : vector<128x128xf32> to vector<1x128x128xf32>
      tpu.vector_store %arg6[%c0_28, %c0_29, %c0_30], %52 {strides = array<i32>} : memref<1x128x128xf32, #tpu.memory_space<vmem>>, vector<1x128x128xf32>,
    } else {
    }
    return
  }
  func.func @transform_0(%arg0: i32, %arg1: i32) -> (i32, i32, i32) {
    %c0_i32 = arith.constant 0 : i32
    %c0_i32_0 = arith.constant 0 : i32
    %c0_i32_1 = arith.constant 0 : i32
    return %arg0, %c0_i32, %c0_i32_0 : i32, i32, i32
  }
  func.func @transform_1(%arg0: i32, %arg1: i32) -> (i32, i32, i32, i32) {
    %c0_i32 = arith.constant 0 : i32
    %c0_i32_0 = arith.constant 0 : i32
    %c0_i32_1 = arith.constant 0 : i32
    %c0_i32_2 = arith.constant 0 : i32
    return %c0_i32, %arg1, %c0_i32_0, %c0_i32_1 : i32, i32, i32, i32
  }
  func.func @transform_2(%arg0: i32, %arg1: i32) -> (i32, i32, i32) {
    %c0_i32 = arith.constant 0 : i32
    %c0_i32_0 = arith.constant 0 : i32
    %c0_i32_1 = arith.constant 0 : i32
    return %arg1, %c0_i32, %c0_i32_0 : i32, i32, i32
  }
  func.func @transform_3(%arg0: i32, %arg1: i32) -> (i32, i32) {
    %c0_i32 = arith.constant 0 : i32
    %c0_i32_0 = arith.constant 0 : i32
    %c0_i32_1 = arith.constant 0 : i32
    return %c0_i32, %c0_i32_0 : i32, i32
  }
  func.func @transform_4(%arg0: i32, %arg1: i32) -> (i32, i32, i32) {
    %c0_i32 = arith.constant 0 : i32
    %c0_i32_0 = arith.constant 0 : i32
    %c0_i32_1 = arith.constant 0 : i32
    return %arg0, %c0_i32, %c0_i32_0 : i32, i32, i32
  }
  func.func @transform_5(%arg0: i32, %arg1: i32) -> (i32, i32, i32, i32) {
    %c0_i32 = arith.constant 0 : i32
    %c0_i32_0 = arith.constant 0 : i32
    %c0_i32_1 = arith.constant 0 : i32
    return %arg0, %arg1, %c0_i32, %c0_i32_0 : i32, i32, i32, i32
  }
}

</mosaic_0001>

<bundles_post_ra>
// kernel: tpu_custom_call.1
= control target key start
LH: loop header
LB: loop body
LE: loop exit
PB: predicated region body
PF: predicated region fallthrough
CT: control target
= control target key end

     0   :  { %s5616_s0 = inlined_call_operand.hbm [shape: f32[2,128,128], index: 0, kind: input, shape index: {}]   ;;  %s5617_s1 = inlined_call_operand.hbm [shape: bf16[3,8,16,128], index: 1, kind: input, shape index: {}]   ;;  %s5618_s2 = inlined_call_operand.hbm [shape: bf16[8,16,128], index: 2, kind: input, shape index: {}]   ;;  %s5619_s3 = inlined_call_operand.vmem [shape: f32[1,128], index: 3, kind: input, shape index: {}]   ;;  %s5620_s4 = inlined_call_operand.hbm [shape: f32[2,128,128], index: 4, kind: output, shape index: {0}]   ;;  %s5621_s5 = inlined_call_operand.hbm [shape: bf16[2,8,128,128], index: 5, kind: output, shape index: {1}]  }
   0x1   :  { %5681 = sst [smem:[#allocation61_spill]] %s5616_s0 }
   0x2   :  { %5682 = sst [smem:[#allocation62_spill]] %s5617_s1 }
   0x3   :  { %5683 = sst [smem:[#allocation63_spill]] %s5620_s4 }
   0x4   :  { %5684 = sst [smem:[#allocation64_spill]] %s5621_s5 }
   0x5   :  { %11 = vsyncpa [#allocation5], 0 }
   0x6   :  { %13 = vsyncpa [#allocation5 + $0x1], 0 }
   0x7   :  { %14 = vsyncpa [#allocation8], 0 }
   0x8   :  { %16 = vsyncpa [#allocation8 + $0x1], 0 }
   0x9   :  { %17 = vsyncpa [#allocation6], 0 }
   0xa   :  { %19 = vsyncpa [#allocation6 + $0x1], 0 }
   0xb   :  { %20 = vsyncpa [#allocation12], 0 }
   0xc   :  { %22 = vsyncpa [#allocation12 + $0x1], 0  ;;  %s4466_s18 = smov 0   ;;  %s4468_s19 = smov 0  }
   0xd   :  { %s4470_s20 = smov 0   ;;  %s4472_s21 = smov 0  }
   0xe   :  { %s4474_s22 = smov 0   ;;  %s4476_s23 = smov 0  }
   0xf   :  { %s4478_s24 = smov 0   ;;  %s4480_s25 = smov 0  }
  0x10   :  { %s4482_s26 = smov 0   ;;  %s4484_s27 = smov 0  }
  0x11   :  { %s4486_s28 = smov 0   ;;  %s4488_s29 = smov 0  }
  0x12   :  { %s4490_s30 = smov 0   ;;  %s4492_s6 = smov 0  }
  0x13 LB: > { %5685 = sst [smem:[#allocation20_spill]] %s4361_s18  ;;  %s4537_s7 = sadd.s32 4294967295, %s4413_s6   ;;  %s4413_s6 = sphi %s4492_s6, %s28_s6   ;;  %s4409_s30 = sphi %s4490_s30, %s5808_s30   ;;  %s4405_s29 = sphi %s4488_s29, %s5807_s29   ;;  %s4401_s28 = sphi %s4486_s28, %s5818_s28   ;;  %s4397_s27 = sphi %s4484_s27, %s5817_s27   ;;  %s4393_s26 = sphi %s4482_s26, %s5804_s26   ;;  %s4389_s25 = sphi %s4480_s25, %s5816_s25   ;;  %s4385_s24 = sphi %s4478_s24, %s5815_s24   ;;  %s4381_s23 = sphi %s4476_s23, %s5814_s23   ;;  %s4377_s22 = sphi %s4474_s22, %s5813_s22   ;;  %s4373_s21 = sphi %s4472_s21, %s5812_s21   ;;  %s4369_s20 = sphi %s4470_s20, %s5801_s20   ;;  %s4365_s19 = sphi %s4468_s19, %s5811_s19   ;;  %s4361_s18 = sphi %s4466_s18, %s5810_s18  }
  0x14   : > { %5686 = sst [smem:[#allocation21_spill]] %s4369_s20  ;;  %s2924_s8 = sadd.s32 4294967294, %s4413_s6  }
  0x15   : > { %5687 = sst [smem:[#allocation22_spill]] %s4385_s24  ;;  %s37_s9 = sadd.s32 1, %s4405_s29 }
  0x16   : > { %5688 = sst [smem:[#allocation23_spill]] %s4393_s26  ;;  %s40_s10 = sadd.s32 1, %s4409_s30 }
  0x17   : > { %5689 = sst [smem:[#allocation24_spill]] %s4401_s28  ;;  %p38_p0 = scmp.ge.s32.totalorder %s37_s9, 2 }
  0x18   : > { %5690 = sst [smem:[#allocation25_spill]] %s4405_s29  ;;  %s47_s11 = sadd.s32 1, %s4393_s26 }
  0x19   : > { %5691 = sst [smem:[#allocation26_spill]] %s4409_s30  ;;  %p54_p1 = scmp.ne.s32.totalorder %s4393_s26, %s4389_s25 }
  0x1a   : > { %p55_p2 = scmp.eq.s32.totalorder %s4413_s6, 0  ;;  %s5820_s9 = smov (%p38_p0, %s37_s9), 0 }
  0x1b   : > { %5692 = sst [smem:[#allocation27_spill]] %s5820_s9  ;;  %s5822_s10 = smov (!%p38_p0, %s40_s10), %s4409_s30 }
  0x1c   : > { %p4554_p3 = por %p55_p2, %p54_p1  ;;  %p5627_p4 = scmp.ne.s32.totalorder %s4389_s25, %s4385_s24 }
  0x1d   : > { %p42_p5 = scmp.ge.s32.totalorder %s5822_s10, 2  ;;  %p61_p6 = scmp.eq.s32.totalorder %s4537_s7, 0 }
  0x1e   : > { %s70_s13 = ssub.s32 %s4405_s29, %s5820_s9  ;;  %s73_s14 = sadd.s32 1, %s4381_s23 }
  0x1f   : > { %s5824_s10 = smov (%p42_p5, %s5822_s10), 0  ;;  %p4571_p7 = por %p61_p6, %p5627_p4 }
  0x20   : > { %5694 = sst [smem:[#allocation28_spill]] %s5824_s10  ;;  %p71_p8 = scmp.eq.s32.totalorder %s70_s13, 0 }
  0x21   : > { %s44_s16 = ssub.s32 %s4409_s30, %s5824_s10  ;;  %p80_p9 = scmp.ne.s32.totalorder %s4381_s23, %s4377_s22 }
  0x22   : > { %p45_p10 = scmp.eq.s32.totalorder %s44_s16, 0  ;;  %p86_p11 = scmp.ne.s32.totalorder %s4377_s22, %s4373_s21 }
  0x23   : > { %s4582_s17 = scalar_select %p71_p8, %s4381_s23, %s73_s14  }
  0x24   : > { %s4585_s9 = scalar_select %p45_p10, %s4393_s26, %s47_s11  }
  0x25   : > { %5696 = sst [smem:[#allocation29_spill]] %s4582_s17  ;;  %p4589_p12 = por %p80_p9, %p55_p2 }
  0x26   : > { %5697 = sst [smem:[#allocation30_spill]] %s4585_s9  ;;  %p4595_p13 = por %p86_p11, %p61_p6 }
  0x27   : > { %p157_p0 = scmp.eq.s32.totalorder %s4537_s7, 3  ;;  %p163_p5 = scmp.eq.s32.totalorder %s2924_s8, 3 }
  0x28   : > { %s5699_s4 = scalar_select %p4595_p13, 1, 0 }
  0x29   : > { %s171_s10 = sor.u32 %s70_s13, %s44_s16  ;;  %s174_s28 = sadd.s32 1, %s4369_s20 }
  0x2a   : > { %p4604_p4 = por %p157_p0, %p54_p1  ;;  %p5702_p8 = scmp.ne.s32.totalorder %s4389_s25, %s4385_s24 }
  0x2b   : > { %p172_p2 = scmp.eq.s32.totalorder %s171_s10, 0  ;;  %p184_p9 = scmp.ne.s32.totalorder %s4369_s20, %s4365_s19 }
  0x2c   : > { %s5700_s21 = scalar_select %p4604_p4, 1, 0 }
  0x2d   : > { %p4611_p10 = por %p163_p5, %p5702_p8  ;;  %p190_p6 = scmp.ne.s32.totalorder %s4365_s19, %s4361_s18 }
  0x2e   : > { %5701 = sst [smem:[#allocation31_spill]] %s5700_s21  ;;  %p4622_p11 = por %p184_p9, %p157_p0 }
  0x2f   : > { %s5703_s11 = scalar_select %p4611_p10, 1, 0 }
  0x30   : > { %s4620_s14 = scalar_select %p172_p2, %s4369_s20, %s174_s28  }
  0x31   : > { %5704 = sst [smem:[#allocation32_spill]] %s5703_s11  ;;  %p4626_p13 = por %p190_p6, %p163_p5 }
  0x32   : > { %5705 = sst [smem:[#allocation33_spill]] %s4620_s14  ;;  %p2926_p1 = scmp.ge.s32.totalorder %s4413_s6, 4 }
  0x33   : > { %s5706_s9 = scalar_select %p4622_p11, 1, 0 }
  0x34   : > { %s5708_s8 = scalar_select %p4626_p13, 1, 0 }
  0x35   : > { %5707 = sst [smem:[#allocation34_spill]] %s5706_s9  ;;  %210 = sbr.rel (%p2926_p1) target bundleno = 99 (0x63), region = 20 }
  0x36   : > { %5709 = sst [smem:[#allocation35_spill]] %s5708_s8  ;;  %s214_s13 = sand.u32 (!%p2926_p1), 1, %s4393_s26  }
  0x37   : > { %s3101_s10 = sshll.u32 (!%p2926_p1), %s4409_s30, 11  ;;  %s2927_s16 = sshll.u32 (!%p2926_p1), %s214_s13, 7 }
  0x38   : > { %s5710_s0 = sld [smem:[#allocation61_spill]] (!%p2926_p1)  ;;  %s218_s20 = scalar_lea.vmem (!%p2926_p1), [#allocation4], %s2927_s16 }
  0x39   : > { %s225_s18 = sshll.u32 (!%p2926_p1), %s218_s20, 4  ;;  %s215_s11 = scalar_lea.sflag (!%p2926_p1), [#allocation5], %s214_s13  ;;  %s226_s18 = int_to_ptr.vmem [resolvable:$true] %s225_s18 }
  0x3a   : > { %s4195_s24 = scalar_lea.vmem %s226_s18, 2048  ;;  %s4415_s8 = smov [#allocation4]  }
  0x3b   : > { %p4196_p0 = scmp.ne.s32.totalorder %s226_s18, %s4195_s24  ;;  %s4199_s9 = sshll.u32 %s4415_s8, 4  ;;  %s4200_s9 = int_to_ptr.vmem [resolvable:$false] %s4199_s9 }
  0x3c   : > { %s4201_s21 = scalar_lea.vmem %s4200_s9, 4096  ;;  %p4202_p2 = scmp.lt.s32.totalorder %s226_s18, %s4200_s9 }
  0x3d   : > { %p4197_p5 = pnand %p4196_p0, %p4554_p3  ;;  %p4203_p9 = scmp.lt.s32.totalorder %s4201_s21, %s4195_s24 }
  0x3e   : > { %s224_s14 = scalar_lea.hbm %s5710_s0, %s3101_s10 }
  0x3f   : > { %p4198_p8 = pneg %p4197_p5  ;;  %p4204_p6 = por %p4203_p9, %p4202_p2 }
  0x41   : > { %p4205_p1 = pnand %p4204_p6, %p4198_p8 }
  0x43   : > { %4208 = shalt.err (!%p4205_p1)
}
  0x44   : > { %s4416_s17 = smov 128   ;;  %s4417_s10 = smov 8  }
  0x45   : > { %3748 = dma.hbm_to_vmem [thread:$0]  (%p4554_p3), %s224_s14, 2048, %s226_s18, %s215_s11, %s4416_s17, %s4416_s17, %s4417_s10  }
  0x46   : > { %s235_s20 = sand.u32 1, %s4413_s6   ;;  %s237_s8 = sand.u32 1, %s4381_s23  }
  0x47   : > { %s3746_s9 = smul.u32 96, %s237_s8  ;;  %s3103_s24 = sshll.u32 %s4405_s29, 9 }
  0x48   : > { %s3749_s21 = scalar_select %p4589_p12, [#allocation0], [#allocation15] }
  0x49   : > { %s5711_s1 = sld [smem:[#allocation62_spill]]  ;;  %s4418_s18 = smov 1024  }
  0x4a   : > { %3750 = sst [smem:[#allocation14]] (%p4589_p12), %s4418_s18  ;;  %s239_s14 = scalar_lea.vmem [#allocation7], %s3746_s9 }
  0x4b   : > { %s251_s11 = sld [smem:[%s3749_s21]]   ;;  %s259_s28 = sshll.u32 %s239_s14, 4  ;;  %s260_s28 = int_to_ptr.vmem [resolvable:$true] %s259_s28 }
  0x4c   : > { %s4419_s17 = smov 512   ;;  %s4420_s10 = smov 8  }
  0x4d   : > { %3751 = sst [smem:[#allocation14 + $0x1]] (%p4589_p12), %s4419_s17  ;;  %s4421_s0 = smov 64  }
  0x4e   : > { %3752 = sst [smem:[#allocation14 + $0x2]] (%p4589_p12), %s4420_s10  ;;  %s4422_s16 = smov 4  }
  0x4f   : > { %s246_s12 = scalar_lea.hbm %s5711_s1, %s3103_s24  ;;  %3753 = sst [smem:[#allocation14 + $0x3]] (%p4589_p12), %s4421_s0 }
  0x50   : > { %3754 = sst [smem:[#allocation14 + $0x4]] (%p4589_p12), %s4421_s0  ;;  %s236_s9 = scalar_lea.sflag [#allocation8], %s235_s20 }
  0x51   : > { %s2933_s13 = sshll.u32 %s251_s11, 26  ;;  %3755 = sst [smem:[#allocation14 + $0x5]] (%p4589_p12), %s4422_s16 }
  0x52   : > { %s2934_s21 = sadd.s32 134217728, %s2933_s13  ;;  %s4423_s18 = smov 131072  }
  0x53   : > { %3756 = dma.general (%p4589_p12), %s246_s12, 1536, %s260_s28, %s236_s9, %s4423_s18, [#allocation14], %s2934_s21, 0  }
  0x54   : > { %s2935_s14 = sshll.u32 %s237_s8, 5  ;;  %s293_s10 = scalar_lea.hbm %s5618_s2, %s3103_s24 }
  0x55   : > { %s286_s30 = scalar_lea.vmem [#allocation9], %s2935_s14  ;;  %s4424_s0 = smov [#allocation9]  }
  0x56   : > { %s294_s29 = sshll.u32 %s286_s30, 4  ;;  %s4225_s11 = sshll.u32 %s4424_s0, 4  ;;  %s295_s29 = int_to_ptr.vmem [resolvable:$true] %s294_s29  ;;  %s4226_s11 = int_to_ptr.vmem [resolvable:$false] %s4225_s11 }
  0x57   : > { %s4221_s26 = scalar_lea.vmem %s295_s29, 512  ;;  %s4227_s20 = scalar_lea.vmem %s4226_s11, 1024 }
  0x58   : > { %p4222_p3 = scmp.ne.s32.totalorder %s295_s29, %s4221_s26  ;;  %p4228_p8 = scmp.lt.s32.totalorder %s295_s29, %s4226_s11 }
  0x59   : > { %p4229_p2 = scmp.lt.s32.totalorder %s4227_s20, %s4221_s26 }
  0x5a   : > { %p4223_p0 = pnand %p4222_p3, %p4589_p12 }
  0x5b   : > { %p4230_p9 = por %p4229_p2, %p4228_p8 }
  0x5c   : > { %p4224_p5 = pneg %p4223_p0 }
  0x5e   : > { %p4231_p6 = pnand %p4230_p9, %p4224_p5 }
  0x60   : > { %4234 = shalt.err (!%p4231_p6)
}
  0x61   : > { %s4425_s1 = smov 64   ;;  %s4426_s8 = smov 4  }
  0x62   : > { %3757 = dma.hbm_to_vmem [thread:$0]  (%p4589_p12), %s293_s10, 512, %s295_s29, %s236_s9, %s4425_s1, %s4425_s1, %s4426_s8  }
  0x63 PF: > { %p2939_p1 = scmp.ge.s32.totalorder %s4413_s6, 1  ;;  %p302_p3 = scmp.lt.s32.totalorder %s4413_s6, 5 }
  0x65   : > { %p303_p0 = pnand %p2939_p1, %p302_p3 }
  0x67   : > { %306 = sbr.rel (%p303_p0) target bundleno = 1956 (0x7a4), region = 36 }
  0x6c   : > { %s4672_s30 = sand.u32 1, %s4389_s25  }
  0x6d   : > { %s2940_s26 = sshll.u32 %s4672_s30, 7  ;;  %s309_s24 = scalar_lea.sflag [#allocation5], %s4672_s30 }
  0x6e   : > { %s4676_s12 = scalar_lea.vmem [#allocation4], %s2940_s26 }
  0x6f   : > { %4344 = dma.done.wait (%p4571_p7), %s309_s24, 2048  }
  0x70   : > { %4346 = vsyncadd (%p4571_p7), %s309_s24, 4294965248  ;;  %s317_s5 = sand.u32 1, %s4537_s7   ;;  %s319_s29 = sand.u32 1, %s4377_s22  }
  0x71   : > { %s3747_s28 = smul.u32 96, %s319_s29  ;;  %s318_s13 = scalar_lea.sflag [#allocation8], %s317_s5 }
  0x72   : > { %p5712_p12 = scmp.ne.s32.totalorder %s5699_s4, 0 }
  0x73   : > { %s4684_s16 = scalar_lea.vmem [#allocation7], %s3747_s28 }
  0x74   : > { %4348 = dma.done.wait (%p5712_p12), %s318_s13, 2048  }
  0x75   : > { %4350 = vsyncadd (%p5712_p12), %s318_s13, 4294965248  ;;  %s2941_s21 = sshll.u32 %s319_s29, 5  ;;  %s369_s9 = sand.u32 1, %s4365_s19  }
  0x76   : > { %s2943_s15 = sshll.u32 %s369_s9, 8  ;;  %s4693_s18 = scalar_lea.vmem [#allocation9], %s2941_s21 }
  0x77   : > { %s4695_s14 = scalar_lea.vmem [#allocation10], %s2940_s26  ;;  %s4697_s7 = scalar_lea.vmem [#allocation11], %s2943_s15 }
  0x78   : > { %p2944_p7 = scmp.ne.s32.totalorder %s4397_s27, 0 }
  0x7a   : > { %379 = sbr.rel (%p2944_p7) target bundleno = 141 (0x8d), region = 52 }
  0x7f   : > { %v380_v0 = vld [vmem:[%s4676_s12] sm:$0xff]  ;;  %v381_v1 = vld [vmem:[%s4676_s12 + $0x8] sm:$0xff]  ;;  %v382_v2 = vld [vmem:[%s4676_s12 + $0x10] sm:$0xff]  ;;  %v4427_v7 = vmov 0.0  }
  0x80   : > { %v3191_v3 = vpack.c.bf16 %v381_v1, %v380_v0  ;;  %v383_v4 = vld [vmem:[%s4676_s12 + $0x18] sm:$0xff]  ;;  %v384_v5 = vld [vmem:[%s4676_s12 + $0x20] sm:$0xff]  ;;  %v385_v6 = vld [vmem:[%s4676_s12 + $0x28] sm:$0xff]  ;;  %476 = vst [vmem:[#allocation3 + $0x30] sm:$0xff] %v4427_v7 }
  0x81   : > { %477 = vst [vmem:[#allocation3] sm:$0xff] %v4427_v7  ;;  %478 = vst [vmem:[#allocation3 + $0x58] sm:$0xff] %v4427_v7  ;;  %v3196_v8 = vpack.c.bf16 %v383_v4, %v382_v2  ;;  %v3201_v9 = vpack.c.bf16 %v385_v6, %v384_v5  ;;  %v386_v10 = vld [vmem:[%s4676_s12 + $0x30] sm:$0xff]  ;;  %v387_v11 = vld [vmem:[%s4676_s12 + $0x38] sm:$0xff] }
  0x82   : > { %479 = vst [vmem:[#allocation3 + $0x18] sm:$0xff] %v4427_v7  ;;  %480 = vst [vmem:[#allocation3 + $0x50] sm:$0xff] %v4427_v7  ;;  %v388_v12 = vld [vmem:[%s4676_s12 + $0x40] sm:$0xff]  ;;  %v3206_v13 = vpack.c.bf16 %v387_v11, %v386_v10  ;;  %v389_v14 = vld [vmem:[%s4676_s12 + $0x48] sm:$0xff] }
  0x83   : > { %481 = vst [vmem:[#allocation3 + $0x68] sm:$0xff] %v4427_v7  ;;  %482 = vst [vmem:[#allocation3 + $0x8] sm:$0xff] %v4427_v7  ;;  %v390_v15 = vld [vmem:[%s4676_s12 + $0x50] sm:$0xff]  ;;  %v391_v16 = vld [vmem:[%s4676_s12 + $0x58] sm:$0xff]  ;;  %v3211_v17 = vpack.c.bf16 %v389_v14, %v388_v12 }
  0x84   : > { %483 = vst [vmem:[#allocation3 + $0x48] sm:$0xff] %v4427_v7  ;;  %484 = vst [vmem:[#allocation3 + $0x40] sm:$0xff] %v4427_v7  ;;  %v3216_v18 = vpack.c.bf16 %v391_v16, %v390_v15  ;;  %v392_v19 = vld [vmem:[%s4676_s12 + $0x60] sm:$0xff]  ;;  %v393_v20 = vld [vmem:[%s4676_s12 + $0x68] sm:$0xff] }
  0x85   : > { %485 = vst [vmem:[#allocation3 + $0x20] sm:$0xff] %v4427_v7  ;;  %486 = vst [vmem:[#allocation3 + $0x10] sm:$0xff] %v4427_v7  ;;  %v394_v21 = vld [vmem:[%s4676_s12 + $0x70] sm:$0xff]  ;;  %v3221_v22 = vpack.c.bf16 %v393_v20, %v392_v19  ;;  %v395_v23 = vld [vmem:[%s4676_s12 + $0x78] sm:$0xff] }
  0x86   : > { %487 = vst [vmem:[#allocation3 + $0x38] sm:$0xff] %v4427_v7  ;;  %488 = vst [vmem:[#allocation3 + $0x60] sm:$0xff] %v4427_v7  ;;  %v3226_v24 = vpack.c.bf16 %v395_v23, %v394_v21 }
  0x87   : > { %489 = vst [vmem:[#allocation3 + $0x70] sm:$0xff] %v4427_v7  ;;  %490 = vst [vmem:[#allocation3 + $0x78] sm:$0xff] %v4427_v7 }
  0x88   : > { %491 = vst [vmem:[#allocation3 + $0x28] sm:$0xff] %v4427_v7  ;;  %3192 = vst [vmem:[#allocation2] sm:$0xff] %v3191_v3  }
  0x89   : > { %3388 = vst [vmem:[#allocation2 + $0x8] sm:$0xff] %v3196_v8   ;;  %3389 = vst [vmem:[#allocation2 + $0x10] sm:$0xff] %v3201_v9  }
  0x8a   : > { %3390 = vst [vmem:[#allocation2 + $0x18] sm:$0xff] %v3206_v13   ;;  %3391 = vst [vmem:[#allocation2 + $0x20] sm:$0xff] %v3211_v17  }
  0x8b   : > { %3392 = vst [vmem:[#allocation2 + $0x28] sm:$0xff] %v3216_v18   ;;  %3393 = vst [vmem:[#allocation2 + $0x30] sm:$0xff] %v3221_v22  }
  0x8c   : > { %3394 = vst [vmem:[#allocation2 + $0x38] sm:$0xff] %v3226_v24  }
  0x8d PF: > { %v3911_v28 = vld [vmem:[%s4684_s16] sm:$0xff]   ;;  %v3912_v34 = vld [vmem:[%s4684_s16 + $0x8] sm:$0xff]   ;;  %v3913_v35 = vld [vmem:[%s4684_s16 + $0x10] sm:$0xff]   ;;  %vm817_vm0 = vcmask 130048   ;;  %vm4429_vm1 = vmmov 0   ;;  %vm2478_vm2 = vcmask 523264  }
  0x8e   : > { %3546 = vmatprep.mubr.bf16.mxu0 %v3911_v28  ;;  %v3914_v36 = vld [vmem:[%s4684_s16 + $0x18] sm:$0xff]   ;;  %v3915_v37 = vld [vmem:[%s4684_s16 + $0x20] sm:$0xff]   ;;  %v3916_v38 = vld [vmem:[%s4684_s16 + $0x28] sm:$0xff]   ;;  %p3089_p5 = scmp.ne.s32.totalorder %s4397_s27, 1 }
  0x8f   : > { %v3910_v33 = vld [vmem:[#allocation2] sm:$0xff]   ;;  %v3917_v39 = vld [vmem:[%s4684_s16 + $0x30] sm:$0xff]   ;;  %v3918_v40 = vld [vmem:[%s4684_s16 + $0x38] sm:$0xff]  }
  0x90   : > { %v3908_v31 = vld [vmem:[#allocation2 + $0x10] sm:$0xff]   ;;  %v3909_v32 = vld [vmem:[#allocation2 + $0x8] sm:$0xff]  }
  0x91   : > { %v3906_v29 = vld [vmem:[#allocation2 + $0x20] sm:$0xff]   ;;  %v3907_v30 = vld [vmem:[#allocation2 + $0x18] sm:$0xff]  }
  0x92   : > { %v3904_v26 = vld [vmem:[#allocation2 + $0x30] sm:$0xff]   ;;  %v3905_v27 = vld [vmem:[#allocation2 + $0x28] sm:$0xff]  }
  0x93   : > { %v3903_v25 = vld [vmem:[#allocation2 + $0x38] sm:$0xff]  }
  0x94   : > { %3530 = vmatprep.subr.bf16.mxu0 %v3903_v25 }
  0x95   : > { %3531 = vmatpush3.bf16.xpose.msra.mxu0 %v3903_v25 }
  0x96   : > { %3532 = vmatprep.subr.bf16.mxu0 %v3904_v26 }
  0x9d   : > { %3533 = vmatpush3.bf16.xpose.msra.mxu0 %v3904_v26 }
  0x9e   : > { %3534 = vmatprep.subr.bf16.mxu0 %v3905_v27 }
  0xa5   : > { %3535 = vmatpush3.bf16.xpose.msra.mxu0 %v3905_v27 }
  0xa6   : > { %3536 = vmatprep.subr.bf16.mxu0 %v3906_v29 }
  0xad   : > { %3537 = vmatpush3.bf16.xpose.msra.mxu0 %v3906_v29 }
  0xae   : > { %3538 = vmatprep.subr.bf16.mxu0 %v3907_v30 }
  0xb5   : > { %3539 = vmatpush3.bf16.xpose.msra.mxu0 %v3907_v30 }
  0xb6   : > { %3540 = vmatprep.subr.bf16.mxu0 %v3908_v31 }
  0xbd   : > { %3541 = vmatpush3.bf16.xpose.msra.mxu0 %v3908_v31 }
  0xbe   : > { %3542 = vmatprep.subr.bf16.mxu0 %v3909_v32 }
  0xc5   : > { %3543 = vmatpush3.bf16.xpose.msra.mxu0 %v3909_v32 }
  0xc6   : > { %3544 = vmatprep.subr.bf16.mxu0 %v3910_v33 }
  0xcd   : > { %3545 = vmatpush3.bf16.xpose.msra.mxu0 %v3910_v33 }
  0xd4   : > { %3547 = vmatmul.mubr.bf16.vlgmr.msra.gmra.mxu0 %v3912_v34 }
  0xd5   : > { %3550 = vmatprep.mubr.bf16.mxu0 %v3913_v35 }
  0xdc   : > { %3551 = vmatmul.mubr.bf16.gmra.mxu0 %v3914_v36 }
  0xdd   : > { %3554 = vmatprep.mubr.bf16.mxu0 %v3915_v37 }
  0xe4   : > { %3555 = vmatmul.mubr.bf16.gmra.mxu0 %v3916_v38 }
  0xe5   : > { %3558 = vmatprep.mubr.bf16.mxu0 %v3917_v39 }
  0xec   : > { %3559 = vmatmul.mubr.bf16.gmra.mxu0 %v3918_v40 }
 0x194   : > { %v3548_v41 = vpop.f32.mrf.mxu0 }
 0x195   : > { %v783_v62 = vmul.f32 0.25, %v3548_v41 }
 0x196   : > { %v686_v42 = vpop.f32.mrf.mxu0 }
 0x197   : > { %v781_v45 = vmul.f32 0.25, %v686_v42 }
 0x198   : > { %v3549_v43 = vpop.f32.mrf.mxu0 }
 0x199   : > { %v784_v61 = vmul.f32 0.25, %v3549_v43 }
 0x19a   : > { %v689_v44 = vpop.f32.mrf.mxu0 }
 0x19b   : > { %v782_v46 = vmul.f32 0.25, %v689_v44  ;;  %v790_v63 = vpack.c.bf16 %v784_v61, %v783_v62 }
 0x19c   : > { %v3552_v47 = vpop.f32.mrf.mxu0 }
 0x19d   : > { %v789_v48 = vpack.c.bf16 %v782_v46, %v781_v45  ;;  %v787_v0 = vmul.f32 0.25, %v3552_v47 }
 0x19e   : > { %v702_v49 = vpop.f32.mrf.mxu0 }
 0x19f   : > { %801 = vxpose.xlu0.c.b16.start.end [1/1] (short) %v789_v48, 128  ;;  %v785_v51 = vmul.f32 0.25, %v702_v49 }
 0x1a0   : > { %v3553_v50 = vpop.f32.mrf.mxu0 }
 0x1a1   : > { %v788_v1 = vmul.f32 0.25, %v3553_v50 }
 0x1a2   : > { %v705_v52 = vpop.f32.mrf.mxu0 }
 0x1a3   : > { %v786_v53 = vmul.f32 0.25, %v705_v52  ;;  %v792_v2 = vpack.c.bf16 %v788_v1, %v787_v0 }
 0x1a4   : > { %v3556_v54 = vpop.f32.mrf.mxu0 }
 0x1a5   : > { %v791_v55 = vpack.c.bf16 %v786_v53, %v785_v51 }
 0x1a6   : > { %v718_v56 = vpop.f32.mrf.mxu0 }
 0x1a7   : > { %1076 = vxpose.xlu1.c.b16.start.end [1/1] (short) %v791_v55, 128 }
 0x1a8   : > { %v3557_v57 = vpop.f32.mrf.mxu0 }
 0x1a9   : > { %v794_v59 = vpack.c.bf16 %v3557_v57, %v3556_v54 }
 0x1aa   : > { %v721_v58 = vpop.f32.mrf.mxu0 }
 0x1ab   : > { %v793_v60 = vpack.c.bf16 %v721_v58, %v718_v56 }
 0x1ac   : > { %v3560_v3 = vpop.f32.mrf.mxu0 }
 0x1ad   : > { %3570 = vmatprep.subr.bf16.mxu1 %v793_v60 }
 0x1ae   : > { %3571 = vmatpush3.bf16.msra.mxu1 %v793_v60  ;;  %v734_v4 = vpop.f32.mrf.mxu0 }
 0x1af   : > { %3588 = vmatprep.subr.bf16.mxu1 %v794_v59 }
 0x1b0   : > { %v3561_v5 = vpop.f32.mrf.mxu0 }
 0x1b1   : > { %v796_v18 = vpack.c.bf16 %v3561_v5, %v3560_v3 }
 0x1b2   : > { %v737_v7 = vpop.f32.mrf.mxu0 }
 0x1b3   : > { %v795_v8 = vpack.c.bf16 %v737_v7, %v734_v4 }
 0x1bc   : > { %939 = vxpose.xlu0.c.b16.start.end [1/1] (short) %v790_v63, 128 }
 0x1c4   : > { %1213 = vxpose.xlu1.c.b16.start.end [1/1] (short) %v792_v2, 128 }
 0x201   : > { %v809_v6 = vpop.trf.xlu0 }
 0x202   : > { %3572 = vmatprep.mubr.msk.bf16.mxu1 %vm817_vm0, %v809_v6 }
 0x205   : > { %v810_v9 = vpop.trf.xlu0 }
 0x206   : > { %3573 = vmatmul.mubr.msk.bf16.vlgmr.msra.gmra.mxu1 %vm817_vm0, %v810_v9 }
 0x207   : > { %3589 = vmatpush3.bf16.msra.mxu1 %v794_v59 }
 0x208   : > { %3606 = vmatprep.subr.bf16.mxu1 %v795_v8 }
 0x209   : > { %v811_v10 = vpop.trf.xlu0  ;;  %v1084_v17 = vpop.trf.xlu1 }
 0x20a   : > { %3576 = vmatprep.mubr.msk.bf16.mxu1 %vm817_vm0, %v811_v10 }
 0x20d   : > { %v812_v11 = vpop.trf.xlu0  ;;  %v1085_v20 = vpop.trf.xlu1 }
 0x20e   : > { %3577 = vmatmul.mubr.msk.bf16.gmra.mxu1 %vm817_vm0, %v812_v11 }
 0x211   : > { %v813_v12 = vpop.trf.xlu0  ;;  %v1086_v23 = vpop.trf.xlu1 }
 0x212   : > { %3580 = vmatprep.mubr.msk.bf16.mxu1 %vm817_vm0, %v813_v12 }
 0x215   : > { %v814_v13 = vpop.trf.xlu0  ;;  %v1087_v25 = vpop.trf.xlu1 }
 0x216   : > { %3581 = vmatmul.mubr.msk.bf16.gmra.mxu1 %vm817_vm0, %v814_v13 }
 0x219   : > { %v815_v14 = vpop.trf.xlu0  ;;  %v1088_v28 = vpop.trf.xlu1 }
 0x21a   : > { %3584 = vmatprep.mubr.msk.bf16.mxu1 %vm817_vm0, %v815_v14 }
 0x21d   : > { %v816_v15 = vpop.trf.xlu0  ;;  %v1089_v30 = vpop.trf.xlu1 }
 0x21e   : > { %3585 = vmatmul.mubr.msk.bf16.gmra.mxu1 %vm817_vm0, %v816_v15 }
 0x221   : > { %v947_v16 = vpop.trf.xlu0  ;;  %v1090_v31 = vpop.trf.xlu1 }
 0x222   : > { %3590 = vmatprep.mubr.msk.bf16.mxu1 %vm817_vm0, %v947_v16 }
 0x225   : > { %v948_v19 = vpop.trf.xlu0  ;;  %v1091_v32 = vpop.trf.xlu1 }
 0x226   : > { %3591 = vmatmul.mubr.msk.bf16.vlgmr.msra.gmra.mxu1 %vm817_vm0, %v948_v19 }
 0x227   : > { %3607 = vmatpush3.bf16.msra.mxu1 %v795_v8 }
 0x228   : > { %3624 = vmatprep.subr.bf16.mxu1 %v796_v18 }
 0x229   : > { %v949_v21 = vpop.trf.xlu0  ;;  %v1221_v33 = vpop.trf.xlu1 }
 0x22a   : > { %3594 = vmatprep.mubr.msk.bf16.mxu1 %vm817_vm0, %v949_v21 }
 0x22d   : > { %v950_v22 = vpop.trf.xlu0  ;;  %v1222_v34 = vpop.trf.xlu1 }
 0x22e   : > { %3595 = vmatmul.mubr.msk.bf16.gmra.mxu1 %vm817_vm0, %v950_v22 }
 0x231   : > { %v951_v24 = vpop.trf.xlu0  ;;  %v1223_v35 = vpop.trf.xlu1 }
 0x232   : > { %3598 = vmatprep.mubr.msk.bf16.mxu1 %vm817_vm0, %v951_v24 }
 0x235   : > { %v952_v26 = vpop.trf.xlu0  ;;  %v1224_v36 = vpop.trf.xlu1 }
 0x236   : > { %3599 = vmatmul.mubr.msk.bf16.gmra.mxu1 %vm817_vm0, %v952_v26 }
 0x239   : > { %v953_v27 = vpop.trf.xlu0  ;;  %v1225_v37 = vpop.trf.xlu1 }
 0x23a   : > { %3602 = vmatprep.mubr.msk.bf16.mxu1 %vm817_vm0, %v953_v27 }
 0x23d   : > { %v954_v29 = vpop.trf.xlu0  ;;  %v1226_v38 = vpop.trf.xlu1 }
 0x23e   : > { %3603 = vmatmul.mubr.msk.bf16.gmra.mxu1 %vm817_vm0, %v954_v29 }
 0x23f   : > { %3608 = vmatprep.mubr.msk.bf16.mxu1 %vm817_vm0, %v1084_v17 }
 0x241   : > { %v1227_v39 = vpop.trf.xlu1 }
 0x245   : > { %v1228_v40 = vpop.trf.xlu1 }
 0x246   : > { %3609 = vmatmul.mubr.msk.bf16.vlgmr.msra.gmra.mxu1 %vm817_vm0, %v1085_v20 }
 0x247   : > { %3612 = vmatprep.mubr.msk.bf16.mxu1 %vm817_vm0, %v1086_v23  ;;  %3625 = vmatpush3.bf16.msra.mxu1 %v796_v18 }
 0x24e   : > { %3613 = vmatmul.mubr.msk.bf16.gmra.mxu1 %vm817_vm0, %v1087_v25 }
 0x24f   : > { %3616 = vmatprep.mubr.msk.bf16.mxu1 %vm817_vm0, %v1088_v28 }
 0x256   : > { %3617 = vmatmul.mubr.msk.bf16.gmra.mxu1 %vm817_vm0, %v1089_v30 }
 0x257   : > { %3620 = vmatprep.mubr.msk.bf16.mxu1 %vm817_vm0, %v1090_v31 }
 0x25e   : > { %3621 = vmatmul.mubr.msk.bf16.gmra.mxu1 %vm817_vm0, %v1091_v32  ;;  %v3919_v32 = vld [vmem:[%s4684_s16 + $0x40] sm:$0xff]  }
 0x25f   : > { %3626 = vmatprep.mubr.msk.bf16.mxu1 %vm817_vm0, %v1221_v33  ;;  %v3920_v33 = vld [vmem:[%s4684_s16 + $0x48] sm:$0xff]   ;;  %3562 = vmatprep.mubr.bf16.mxu0 %v3919_v32 }
 0x260   : > { %3563 = vmatmul.mubr.bf16.gmra.mxu0 %v3920_v33 }
 0x266   : > { %3627 = vmatmul.mubr.msk.bf16.vlgmr.msra.gmra.mxu1 %vm817_vm0, %v1222_v34 }
 0x267   : > { %3630 = vmatprep.mubr.msk.bf16.mxu1 %vm817_vm0, %v1223_v35 }
 0x26e   : > { %3631 = vmatmul.mubr.msk.bf16.gmra.mxu1 %vm817_vm0, %v1224_v36 }
 0x26f   : > { %3634 = vmatprep.mubr.msk.bf16.mxu1 %vm817_vm0, %v1225_v37 }
 0x276   : > { %3635 = vmatmul.mubr.msk.bf16.gmra.mxu1 %vm817_vm0, %v1226_v38 }
 0x277   : > { %3638 = vmatprep.mubr.msk.bf16.mxu1 %vm817_vm0, %v1227_v39 }
 0x27e   : > { %3639 = vmatmul.mubr.msk.bf16.gmra.mxu1 %vm817_vm0, %v1228_v40 }
 0x2c6   : > { %v4756_v41 = vpop.f32.mrf.mxu1 }
 0x2c8   : > { %v4758_v42 = vpop.f32.mrf.mxu1 }
 0x2ca   : > { %v4760_v43 = vpop.f32.mrf.mxu1 }
 0x2cc   : > { %v4762_v44 = vpop.f32.mrf.mxu1 }
 0x2ce   : > { %v4764_v45 = vpop.f32.mrf.mxu1 }
 0x2cf   : > { %1362 = vmax.xlane.f32.xlu0 %v4764_v45 }
 0x2d0   : > { %v4767_v46 = vpop.f32.mrf.mxu1 }
 0x2d2   : > { %v4769_v47 = vpop.f32.mrf.mxu1 }
 0x2d3   : > { %1358 = vmax.xlane.f32.xlu0 %v4767_v46  ;;  %1364 = vmax.xlane.f32.xlu1 %v4769_v47 }
 0x2d4   : > { %v4773_v48 = vpop.f32.mrf.mxu1 }
 0x2d6   : > { %v4775_v49 = vpop.f32.mrf.mxu1 }
 0x2d7   : > { %1360 = vmax.xlane.f32.xlu1 %v4773_v48  ;;  %1370 = vmax.xlane.f32.xlu0 %v4775_v49 }
 0x2d8   : > { %v4779_v50 = vpop.f32.mrf.mxu1 }
 0x2da   : > { %v4781_v51 = vpop.f32.mrf.mxu1 }
 0x2db   : > { %1366 = vmax.xlane.f32.xlu0 %v4779_v50  ;;  %1372 = vmax.xlane.f32.xlu1 %v4781_v51 }
 0x2dc   : > { %v4785_v52 = vpop.f32.mrf.mxu1 }
 0x2de   : > { %v4787_v53 = vpop.f32.mrf.mxu1 }
 0x2df   : > { %1368 = vmax.xlane.f32.xlu1 %v4785_v52  ;;  %1378 = vmax.xlane.f32.xlu0 %v4787_v53 }
 0x2e0   : > { %v4791_v54 = vpop.f32.mrf.mxu1 }
 0x2e2   : > { %v4793_v55 = vpop.f32.mrf.mxu1 }
 0x2e3   : > { %1374 = vmax.xlane.f32.xlu0 %v4791_v54  ;;  %1380 = vmax.xlane.f32.xlu1 %v4793_v55 }
 0x2e4   : > { %v4797_v56 = vpop.f32.mrf.mxu1 }
 0x2e6   : > { %v4799_v57 = vpop.f32.mrf.mxu1 }
 0x2e7   : > { %1376 = vmax.xlane.f32.xlu1 %v4797_v56 }
 0x2e8   : > { %v4802_v58 = vpop.f32.mrf.mxu1 }
 0x2ea   : > { %v4804_v59 = vpop.f32.mrf.mxu1 }
 0x2ec   : > { %v4806_v60 = vpop.f32.mrf.mxu1 }
 0x2ee   : > { %v4808_v61 = vpop.f32.mrf.mxu1 }
 0x2ef   : > { %1394 = vmax.xlane.f32.xlu0 %v4808_v61 }
 0x2f0   : > { %v4811_v62 = vpop.f32.mrf.mxu1 }
 0x2f2   : > { %v4813_v63 = vpop.f32.mrf.mxu1 }
 0x2f3   : > { %1390 = vmax.xlane.f32.xlu0 %v4811_v62  ;;  %1396 = vmax.xlane.f32.xlu1 %v4813_v63 }
 0x2f4   : > { %v4817_v0 = vpop.f32.mrf.mxu1 }
 0x2f6   : > { %v4819_v1 = vpop.f32.mrf.mxu1 }
 0x2f7   : > { %1392 = vmax.xlane.f32.xlu1 %v4817_v0  ;;  %1402 = vmax.xlane.f32.xlu0 %v4819_v1 }
 0x2f8   : > { %v4823_v2 = vpop.f32.mrf.mxu1 }
 0x2fa   : > { %v4825_v3 = vpop.f32.mrf.mxu1 }
 0x2fb   : > { %1398 = vmax.xlane.f32.xlu0 %v4823_v2  ;;  %1404 = vmax.xlane.f32.xlu1 %v4825_v3 }
 0x2fc   : > { %v4829_v4 = vpop.f32.mrf.mxu1 }
 0x2fe   : > { %v4831_v5 = vpop.f32.mrf.mxu1 }
 0x2ff   : > { %1400 = vmax.xlane.f32.xlu1 %v4829_v4  ;;  %1410 = vmax.xlane.f32.xlu0 %v4831_v5 }
 0x300   : > { %v4835_v6 = vpop.f32.mrf.mxu1 }
 0x302   : > { %v4837_v7 = vpop.f32.mrf.mxu1 }
 0x303   : > { %1386 = vmax.xlane.f32.xlu0 %v4799_v57  ;;  %1412 = vmax.xlane.f32.xlu1 %v4837_v7 }
 0x304   : > { %v4841_v8 = vpop.f32.mrf.mxu1 }
 0x306   : > { %v4843_v9 = vpop.f32.mrf.mxu1 }
 0x307   : > { %1406 = vmax.xlane.f32.xlu0 %v4835_v6  ;;  %1388 = vmax.xlane.f32.xlu1 %v4804_v59 }
 0x308   : > { %v4847_v10 = vpop.f32.mrf.mxu1 }
 0x30a   : > { %v4849_v11 = vpop.f32.mrf.mxu1 }
 0x30b   : > { %1354 = vmax.xlane.f32.xlu0 %v4756_v41  ;;  %1408 = vmax.xlane.f32.xlu1 %v4841_v8 }
 0x30c   : > { %v4853_v12 = vpop.f32.mrf.mxu1 }
 0x30e   : > { %v4855_v13 = vpop.f32.mrf.mxu1 }
 0x30f   : > { %5713 = vst [vmem:[#allocation36_spill] sm:$0xff] %v4855_v13  ;;  %1382 = vmax.xlane.f32.xlu0 %v4802_v58  ;;  %1356 = vmax.xlane.f32.xlu1 %v4760_v43 }
 0x310   : > { %v4859_v14 = vpop.f32.mrf.mxu1 }
 0x311   : > { %5714 = vst [vmem:[#allocation37_spill] sm:$0xff] %v4859_v14 }
 0x312   : > { %v4861_v15 = vpop.f32.mrf.mxu1 }
 0x313   : > { %5715 = vst [vmem:[#allocation38_spill] sm:$0xff] %v4861_v15  ;;  %1350 = vmax.xlane.f32.xlu0 %v4758_v42  ;;  %1384 = vmax.xlane.f32.xlu1 %v4806_v60 }
 0x314   : > { %v4865_v16 = vpop.f32.mrf.mxu1 }
 0x315   : > { %5716 = vst [vmem:[#allocation39_spill] sm:$0xff] %v4865_v16 }
 0x316   : > { %v4867_v17 = vpop.f32.mrf.mxu1 }
 0x317   : > { %5717 = vst [vmem:[#allocation40_spill] sm:$0xff] %v4867_v17  ;;  %1352 = vmax.xlane.f32.xlu1 %v4762_v44  ;;  %1426 = vmax.xlane.f32.xlu0 %v4855_v13 }
 0x318   : > { %v4871_v18 = vpop.f32.mrf.mxu1 }
 0x319   : > { %5718 = vst [vmem:[#allocation41_spill] sm:$0xff] %v4871_v18 }
 0x31a   : > { %v4873_v19 = vpop.f32.mrf.mxu1 }
 0x31b   : > { %5719 = vst [vmem:[#allocation42_spill] sm:$0xff] %v4873_v19  ;;  %1422 = vmax.xlane.f32.xlu0 %v4859_v14  ;;  %1428 = vmax.xlane.f32.xlu1 %v4861_v15 }
 0x31c   : > { %v4877_v20 = vpop.f32.mrf.mxu1 }
 0x31d   : > { %5720 = vst [vmem:[#allocation43_spill] sm:$0xff] %v4877_v20 }
 0x31e   : > { %v4879_v21 = vpop.f32.mrf.mxu1 }
 0x31f   : > { %1424 = vmax.xlane.f32.xlu1 %v4865_v16  ;;  %1434 = vmax.xlane.f32.xlu0 %v4867_v17 }
 0x320   : > { %v4883_v22 = vpop.f32.mrf.mxu1 }
 0x321   : > { %5721 = vst [vmem:[#allocation44_spill] sm:$0xff] %v4883_v22 }
 0x322   : > { %v4885_v23 = vpop.f32.mrf.mxu1 }
 0x323   : > { %1430 = vmax.xlane.f32.xlu0 %v4871_v18  ;;  %1436 = vmax.xlane.f32.xlu1 %v4873_v19 }
 0x324   : > { %v4889_v24 = vpop.f32.mrf.mxu1 }
 0x325   : > { %5722 = vst [vmem:[#allocation45_spill] sm:$0xff] %v4889_v24 }
 0x326   : > { %v4891_v25 = vpop.f32.mrf.mxu1 }
 0x327   : > { %1432 = vmax.xlane.f32.xlu1 %v4877_v20  ;;  %1442 = vmax.xlane.f32.xlu0 %v4879_v21 }
 0x328   : > { %v4895_v26 = vpop.f32.mrf.mxu1 }
 0x32a   : > { %v4897_v27 = vpop.f32.mrf.mxu1 }
 0x32b   : > { %1438 = vmax.xlane.f32.xlu0 %v4883_v22  ;;  %1444 = vmax.xlane.f32.xlu1 %v4885_v23 }
 0x32c   : > { %v4901_v28 = vpop.f32.mrf.mxu1 }
 0x32e   : > { %v4903_v29 = vpop.f32.mrf.mxu1 }
 0x32f   : > { %5723 = vst [vmem:[#allocation46_spill] sm:$0xff] %v4903_v29  ;;  %1440 = vmax.xlane.f32.xlu1 %v4889_v24  ;;  %1458 = vmax.xlane.f32.xlu0 %v4903_v29 }
 0x330   : > { %v4907_v30 = vpop.f32.mrf.mxu1 }
 0x331   : > { %5724 = vst [vmem:[#allocation47_spill] sm:$0xff] %v4907_v30 }
 0x332   : > { %v4909_v31 = vpop.f32.mrf.mxu1 }
 0x333   : > { %5725 = vst [vmem:[#allocation48_spill] sm:$0xff] %v4909_v31  ;;  %1454 = vmax.xlane.f32.xlu0 %v4907_v30  ;;  %1460 = vmax.xlane.f32.xlu1 %v4909_v31 }
 0x334   : > { %v4915_v34 = vpop.f32.mrf.mxu1 }
 0x335   : > { %5726 = vst [vmem:[#allocation49_spill] sm:$0xff] %v4915_v34 }
 0x336   : > { %v4917_v35 = vpop.f32.mrf.mxu1 }
 0x337   : > { %5727 = vst [vmem:[#allocation50_spill] sm:$0xff] %v4917_v35  ;;  %1456 = vmax.xlane.f32.xlu1 %v4915_v34  ;;  %1466 = vmax.xlane.f32.xlu0 %v4917_v35 }
 0x338   : > { %v4921_v36 = vpop.f32.mrf.mxu1 }
 0x339   : > { %5728 = vst [vmem:[#allocation51_spill] sm:$0xff] %v4921_v36 }
 0x33a   : > { %v4923_v37 = vpop.f32.mrf.mxu1 }
 0x33b   : > { %5729 = vst [vmem:[#allocation52_spill] sm:$0xff] %v4923_v37  ;;  %1462 = vmax.xlane.f32.xlu0 %v4921_v36  ;;  %1468 = vmax.xlane.f32.xlu1 %v4923_v37 }
 0x33c   : > { %v4927_v38 = vpop.f32.mrf.mxu1 }
 0x33d   : > { %5730 = vst [vmem:[#allocation53_spill] sm:$0xff] %v4927_v38 }
 0x33e   : > { %v4929_v39 = vpop.f32.mrf.mxu1 }
 0x33f   : > { %1464 = vmax.xlane.f32.xlu1 %v4927_v38  ;;  %1474 = vmax.xlane.f32.xlu0 %v4929_v39 }
 0x340   : > { %v4933_v40 = vpop.f32.mrf.mxu1 }
 0x342   : > { %v4935_v32 = vpop.f32.mrf.mxu1 }
 0x343   : > { %1470 = vmax.xlane.f32.xlu0 %v4933_v40  ;;  %1476 = vmax.xlane.f32.xlu1 %v4935_v32 }
 0x344   : > { %v4939_v33 = vpop.f32.mrf.mxu1 }
 0x345   : > { %5731 = vst [vmem:[#allocation54_spill] sm:$0xff] %v4939_v33 }
 0x347   : > { %1472 = vmax.xlane.f32.xlu1 %v4939_v33 }
 0x358   : > { %v4942_v16 = vpop.xlane.xlu0 %1362 }
 0x35c   : > { %v4944_v34 = vpop.xlane.xlu0 %1358  ;;  %v4946_v14 = vpop.xlane.xlu1 %1364 }
 0x360   : > { %v4948_v30 = vpop.xlane.xlu1 %1360  ;;  %v1371_v15 = vpop.xlane.xlu0 %1370 }
 0x361   : > { %v1488_v31 = vsub.f32 %v4775_v49, %v1371_v15 }
 0x363   : > { %v1562_v13 = vmul.f32 1.442695, %v1488_v31 }
 0x364   : > { %v4951_v29 = vpop.xlane.xlu0 %1366  ;;  %v1373_v20 = vpop.xlane.xlu1 %1372 }
 0x365   : > { %v1489_v38 = vsub.f32 %v4781_v51, %v1373_v20  ;;  %3927 = vpow2.f32 %v1562_v13 }
 0x367   : > { %v1564_v18 = vmul.f32 1.442695, %v1489_v38 }
 0x368   : > { %v4954_v36 = vpop.xlane.xlu1 %1368  ;;  %v1379_v19 = vpop.xlane.xlu0 %1378 }
 0x369   : > { %v1492_v37 = vsub.f32 %v4787_v53, %v1379_v19  ;;  %3929 = vpow2.f32 %v1564_v18 }
 0x36b   : > { %v1570_v17 = vmul.f32 1.442695, %v1492_v37 }
 0x36c   : > { %v1375_v35 = vpop.xlane.xlu0 %1374  ;;  %v1381_v24 = vpop.xlane.xlu1 %1380 }
 0x36d   : > { %v1490_v33 = vsub.f32 %v4791_v54, %v1375_v35  ;;  %v1493_v49 = vsub.f32 %v4793_v55, %v1381_v24  ;;  %3931 = vpow2.f32 %v1570_v17 }
 0x36f   : > { %v1566_v15 = vmul.f32 1.442695, %v1490_v33  ;;  %v1572_v31 = vmul.f32 1.442695, %v1493_v49 }
 0x370   : > { %v1377_v22 = vpop.xlane.xlu1 %1376 }
 0x371   : > { %3933 = vpow2.f32 %v1566_v15  ;;  %v1491_v51 = vsub.f32 %v4797_v56, %v1377_v22 }
 0x372   : > { %3935 = vpow2.f32 %v1572_v31  ;;  %v4960_v13 = vpop.eup %3927 }
 0x373   : > { %v1568_v20 = vmul.f32 1.442695, %v1491_v51  ;;  %1690 = vadd.xlane.f32.xlu0 %v4960_v13 }
 0x375   : > { %3937 = vpow2.f32 %v1568_v20 }
 0x376   : > { %v4963_v53 = vpop.eup %3929 }
 0x377   : > { %1692 = vadd.xlane.f32.xlu1 %v4963_v53 }
 0x378   : > { %v4966_v54 = vpop.xlane.xlu0 %1394 }
 0x37a   : > { %v4968_v55 = vpop.eup %3931 }
 0x37b   : > { %5732 = vst [vmem:[#allocation55_spill] sm:$0xff] %v4968_v55  ;;  %1698 = vadd.xlane.f32.xlu0 %v4968_v55 }
 0x37c   : > { %v4971_v17 = vpop.xlane.xlu0 %1390  ;;  %v4973_v56 = vpop.xlane.xlu1 %1396 }
 0x37e   : > { %v4975_v18 = vpop.eup %3933 }
 0x37f   : > { %5733 = vst [vmem:[#allocation56_spill] sm:$0xff] %v4975_v18  ;;  %v4977_v19 = vpop.eup %3935  ;;  %1694 = vadd.xlane.f32.xlu0 %v4975_v18 }
 0x380   : > { %5734 = vst [vmem:[#allocation57_spill] sm:$0xff] %v4977_v19  ;;  %1700 = vadd.xlane.f32.xlu1 %v4977_v19  ;;  %v4981_v22 = vpop.xlane.xlu1 %1392  ;;  %v1403_v24 = vpop.xlane.xlu0 %1402 }
 0x381   : > { %v1504_v35 = vsub.f32 %v4819_v1, %v1403_v24 }
 0x382   : > { %v4984_v37 = vpop.eup %3937 }
 0x383   : > { %5735 = vst [vmem:[#allocation58_spill] sm:$0xff] %v4984_v37  ;;  %v1594_v38 = vmul.f32 1.442695, %v1504_v35 }
 0x384   : > { %1696 = vadd.xlane.f32.xlu1 %v4984_v37  ;;  %v1399_v33 = vpop.xlane.xlu0 %1398  ;;  %v1405_v49 = vpop.xlane.xlu1 %1404  ;;  %v5664_v37 = vmov 0.0  }
 0x385   : > { %v1505_v15 = vsub.f32 %v4825_v3, %v1405_v49  ;;  %3939 = vpow2.f32 %v1594_v38  ;;  %3642 = vmatprep.subr.bf16.mxu0 %v5664_v37  ;;  %3662 = vmatprep.subr.bf16.mxu1 %v5664_v37  ;;  %v1502_v49 = vsub.f32 %v4823_v2, %v1399_v33  ;;  %v1485_v37 = vsub.f32 %v4769_v47, %v4946_v14 }
 0x386   : > { %v1482_v47 = vsub.f32 %v4767_v46, %v4944_v34  ;;  %v1483_v46 = vsub.f32 %v4773_v48, %v4948_v30 }
 0x387   : > { %v1596_v31 = vmul.f32 1.442695, %v1505_v15  ;;  %v1556_v14 = vmul.f32 1.442695, %v1485_v37 }
 0x388   : > { %v1401_v51 = vpop.xlane.xlu1 %1400  ;;  %v1411_v20 = vpop.xlane.xlu0 %1410 }
 0x389   : > { %v1508_v18 = vsub.f32 %v4831_v5, %v1411_v20  ;;  %3941 = vpow2.f32 %v1596_v31  ;;  %v1590_v31 = vmul.f32 1.442695, %v1502_v49 }
 0x38b   : > { %v1602_v19 = vmul.f32 1.442695, %v1508_v18 }
 0x38c   : > { %v4989_v55 = vpop.xlane.xlu0 %1386  ;;  %v1413_v1 = vpop.xlane.xlu1 %1412 }
 0x38d   : > { %v1509_v24 = vsub.f32 %v4837_v7, %v1413_v1  ;;  %3943 = vpow2.f32 %v1602_v19  ;;  %v1503_v1 = vsub.f32 %v4829_v4, %v1401_v51 }
 0x38f   : > { %v1604_v35 = vmul.f32 1.442695, %v1509_v24 }
 0x390   : > { %v1407_v3 = vpop.xlane.xlu0 %1406  ;;  %v4994_v38 = vpop.xlane.xlu1 %1388 }
 0x391   : > { %v1506_v5 = vsub.f32 %v4835_v6, %v1407_v3  ;;  %3945 = vpow2.f32 %v1604_v35  ;;  %v1486_v35 = vsub.f32 %v4779_v50, %v4951_v29  ;;  %v1592_v3 = vmul.f32 1.442695, %v1503_v1 }
 0x392   : > { %v4998_v18 = vpop.eup %3939  ;;  %v1497_v48 = vsub.f32 %v4804_v59, %v4994_v38 }
 0x393   : > { %v1598_v15 = vmul.f32 1.442695, %v1506_v5  ;;  %1722 = vadd.xlane.f32.xlu0 %v4998_v18  ;;  %v1558_v51 = vmul.f32 1.442695, %v1486_v35  ;;  %v1487_v5 = vsub.f32 %v4785_v52, %v4954_v36  ;;  %v1501_v35 = vsub.f32 %v4813_v63, %v4973_v56 }
 0x394   : > { %v5001_v7 = vpop.xlane.xlu0 %1354  ;;  %v1409_v19 = vpop.xlane.xlu1 %1408 }
 0x395   : > { %3947 = vpow2.f32 %v1598_v15  ;;  %v1507_v20 = vsub.f32 %v4841_v8, %v1409_v19 }
 0x396   : > { %v5005_v24 = vpop.eup %3941  ;;  %3949 = vpow2.f32 %v1590_v31  ;;  %v1560_v31 = vmul.f32 1.442695, %v1487_v5  ;;  %v1588_v5 = vmul.f32 1.442695, %v1501_v35 }
 0x397   : > { %v1600_v2 = vmul.f32 1.442695, %v1507_v20  ;;  %1724 = vadd.xlane.f32.xlu1 %v5005_v24  ;;  %v1500_v20 = vsub.f32 %v4808_v61, %v4966_v54 }
 0x398   : > { %v5008_v6 = vpop.xlane.xlu0 %1382  ;;  %v5010_v33 = vpop.xlane.xlu1 %1356 }
 0x399   : > { %3951 = vpow2.f32 %v1600_v2  ;;  %v1586_v2 = vmul.f32 1.442695, %v1500_v20  ;;  %v3921_v20 = vld [vmem:[%s4684_s16 + $0x50] sm:$0xff]   ;;  %v1494_v59 = vsub.f32 %v4802_v58, %v5008_v6 }
 0x39a   : > { %v5014_v49 = vpop.eup %3943  ;;  %3953 = vpow2.f32 %v1592_v3  ;;  %3566 = vmatprep.mubr.bf16.mxu0 %v3921_v20  ;;  %v1550_v20 = vmul.f32 1.442695, %v1482_v47 }
 0x39b   : > { %1730 = vadd.xlane.f32.xlu0 %v5014_v49  ;;  %3955 = vpow2.f32 %v1558_v51  ;;  %v1484_v51 = vsub.f32 %v4764_v45, %v4942_v16  ;;  %v1498_v45 = vsub.f32 %v4811_v62, %v4971_v17  ;;  %v1499_v62 = vsub.f32 %v4817_v0, %v4981_v22 }
 0x39c   : > { %v5017_v4 = vpop.xlane.xlu0 %1350  ;;  %v5019_v8 = vpop.xlane.xlu1 %1384  ;;  %3957 = vpow2.f32 %v1560_v31  ;;  %v1496_v0 = vsub.f32 %v4799_v57, %v4989_v55  ;;  %v1480_v57 = vsub.f32 %v4756_v41, %v5001_v7  ;;  %v1481_v41 = vsub.f32 %v4760_v43, %v5010_v33 }
 0x39d   : > { %3959 = vpow2.f32 %v1586_v2  ;;  %v1584_v34 = vmul.f32 1.442695, %v1499_v62  ;;  %v1478_v58 = vsub.f32 %v4758_v42, %v5017_v4  ;;  %v1495_v43 = vsub.f32 %v4806_v60, %v5019_v8 }
 0x39e   : > { %v5023_v15 = vpop.eup %3945  ;;  %3961 = vpow2.f32 %v1588_v5  ;;  %v1578_v30 = vmul.f32 1.442695, %v1496_v0  ;;  %v1546_v38 = vmul.f32 1.442695, %v1480_v57 }
 0x39f   : > { %1450 = vmax.xlane.f32.xlu0 %v4891_v25  ;;  %1732 = vadd.xlane.f32.xlu1 %v5023_v15 }
 0x3a0   : > { %v5027_v50 = vpop.xlane.xlu1 %1352  ;;  %v5029_v29 = vpop.xlane.xlu0 %1426 }
 0x3a1   : > { %v1479_v42 = vsub.f32 %v4762_v44, %v5027_v50 }
 0x3a2   : > { %v5031_v19 = vpop.eup %3947 }
 0x3a3   : > { %1726 = vadd.xlane.f32.xlu0 %v5031_v19  ;;  %1452 = vmax.xlane.f32.xlu1 %v4897_v27  ;;  %v5041_v1 = vpop.eup %3949 }
 0x3a4   : > { %v5037_v52 = vpop.xlane.xlu0 %1422  ;;  %v5039_v36 = vpop.xlane.xlu1 %1428  ;;  %5736 = vst [vmem:[#allocation59_spill] sm:$0xff] %v5041_v1 }
 0x3a6   : > { %v5045_v3 = vpop.eup %3951 }
 0x3a7   : > { %5737 = vst [vmem:[#allocation60_spill] sm:$0xff] %v5045_v3  ;;  %1718 = vadd.xlane.f32.xlu0 %v5041_v1  ;;  %1728 = vadd.xlane.f32.xlu1 %v5045_v3  ;;  %v5055_v31 = vpop.eup %3953  ;;  %v3922_v1 = vld [vmem:[%s4684_s16 + $0x58] sm:$0xff]   ;;  %v1554_v3 = vmul.f32 1.442695, %v1484_v51  ;;  %v1582_v51 = vmul.f32 1.442695, %v1498_v45 }
 0x3a8   : > { %v5049_v61 = vpop.xlane.xlu1 %1424  ;;  %v5051_v54 = vpop.xlane.xlu0 %1434  ;;  %3567 = vmatmul.mubr.bf16.gmra.mxu0 %v3922_v1  ;;  %v1552_v45 = vmul.f32 1.442695, %v1483_v46  ;;  %v1574_v46 = vmul.f32 1.442695, %v1494_v59 }
 0x3a9   : > { %v5069_v16 = vpop.eup %3955  ;;  %3963 = vpow2.f32 %v1554_v3 }
 0x3aa   : > { %v5081_v17 = vpop.eup %3957  ;;  %3965 = vpow2.f32 %v1556_v14 }
 0x3ab   : > { %1418 = vmax.xlane.f32.xlu0 %v4843_v9  ;;  %1720 = vadd.xlane.f32.xlu1 %v5055_v31  ;;  %3967 = vpow2.f32 %v1582_v51  ;;  %v5093_v22 = vpop.eup %3959  ;;  %v1580_v51 = vmul.f32 1.442695, %v1497_v48  ;;  %v1542_v48 = vmul.f32 1.442695, %v1478_v58 }
 0x3ac   : > { %v5059_v63 = vpop.xlane.xlu0 %1430  ;;  %v5061_v56 = vpop.xlane.xlu1 %1436  ;;  %3969 = vpow2.f32 %v1550_v20 }
 0x3ad   : > { %3971 = vpow2.f32 %v1584_v34  ;;  %v5105_v55 = vpop.eup %3961  ;;  %v1548_v34 = vmul.f32 1.442695, %v1481_v41 }
 0x3ae   : > { %3973 = vpow2.f32 %v1552_v45 }
 0x3af   : > { %1686 = vadd.xlane.f32.xlu0 %v5069_v16  ;;  %1420 = vmax.xlane.f32.xlu1 %v4849_v11  ;;  %3975 = vpow2.f32 %v1578_v30  ;;  %v1576_v30 = vmul.f32 1.442695, %v1495_v43 }
 0x3b0   : > { %v5073_v2 = vpop.xlane.xlu1 %1432  ;;  %v5075_v35 = vpop.xlane.xlu0 %1442  ;;  %3977 = vpow2.f32 %v1580_v51  ;;  %v1544_v51 = vmul.f32 1.442695, %v1479_v42 }
 0x3b1   : > { %3979 = vpow2.f32 %v1546_v38  ;;  %v1524_v59 = vsub.f32 %v4879_v21, %v5075_v35 }
 0x3b2   : > { %3981 = vpow2.f32 %v1574_v46 }
 0x3b3   : > { %1446 = vmax.xlane.f32.xlu0 %v4895_v26  ;;  %1688 = vadd.xlane.f32.xlu1 %v5081_v17  ;;  %3983 = vpow2.f32 %v1548_v34  ;;  %v1634_v34 = vmul.f32 1.442695, %v1524_v59  ;;  %v5739_v59 = vld [vmem:[#allocation54_spill] sm:$0xff] }
 0x3b4   : > { %v5085_v1 = vpop.xlane.xlu0 %1438  ;;  %v5087_v5 = vpop.xlane.xlu1 %1444  ;;  %3985 = vpow2.f32 %v1542_v48 }
 0x3b5   : > { %3987 = vpow2.f32 %v1576_v30  ;;  %v1525_v43 = vsub.f32 %v4885_v23, %v5087_v5 }
 0x3b6   : > { %v5117_v7 = vpop.eup %3963  ;;  %3989 = vpow2.f32 %v1544_v51 }
 0x3b7   : > { %1714 = vadd.xlane.f32.xlu0 %v5093_v22  ;;  %1448 = vmax.xlane.f32.xlu1 %v4901_v28  ;;  %v5127_v6 = vpop.eup %3965  ;;  %v1636_v23 = vmul.f32 1.442695, %v1525_v43 }
 0x3b8   : > { %v5097_v37 = vpop.xlane.xlu1 %1440  ;;  %v5099_v3 = vpop.xlane.xlu0 %1458 }
 0x3b9   : > { %v5131_v33 = vpop.eup %3967 }
 0x3ba   : > { %v5141_v4 = vpop.eup %3969 }
 0x3bb   : > { %1414 = vmax.xlane.f32.xlu0 %v4847_v10  ;;  %1716 = vadd.xlane.f32.xlu1 %v5105_v55  ;;  %v5143_v60 = vpop.eup %3971 }
 0x3bc   : > { %v5109_v47 = vpop.xlane.xlu0 %1454  ;;  %v5111_v14 = vpop.xlane.xlu1 %1460 }
 0x3bd   : > { %v5152_v50 = vpop.eup %3973 }
 0x3be   : > { %v5154_v38 = vpop.eup %3975 }
 0x3bf   : > { %1682 = vadd.xlane.f32.xlu0 %v5117_v7  ;;  %1416 = vmax.xlane.f32.xlu1 %v4853_v12 }
 0x3c0   : > { %v5121_v62 = vpop.xlane.xlu1 %1456  ;;  %v5123_v20 = vpop.xlane.xlu0 %1466 }
 0x3c3   : > { %1710 = vadd.xlane.f32.xlu0 %v5131_v33  ;;  %1684 = vadd.xlane.f32.xlu1 %v5127_v6 }
 0x3c4   : > { %v5135_v0 = vpop.xlane.xlu0 %1462  ;;  %v5137_v45 = vpop.xlane.xlu1 %1468 }
 0x3c7   : > { %1678 = vadd.xlane.f32.xlu0 %v5141_v4  ;;  %1712 = vadd.xlane.f32.xlu1 %v5143_v60 }
 0x3c8   : > { %v5147_v8 = vpop.xlane.xlu1 %1464  ;;  %v1475_v57 = vpop.xlane.xlu0 %1474 }
 0x3c9   : > { %v1540_v44 = vsub.f32 %v4929_v39, %v1475_v57  ;;  %v5161_v39 = vpop.eup %3977  ;;  %v5738_v57 = vld [vmem:[#allocation44_spill] sm:$0xff] }
 0x3ca   : > { %v5164_v48 = vpop.eup %3979  ;;  %v1522_v51 = vsub.f32 %v5738_v57, %v5085_v1  ;;  %v5741_v1 = vld [vmem:[#allocation50_spill] sm:$0xff] }
 0x3cb   : > { %v1666_v41 = vmul.f32 1.442695, %v1540_v44  ;;  %1706 = vadd.xlane.f32.xlu0 %v5154_v38  ;;  %1680 = vadd.xlane.f32.xlu1 %v5152_v50  ;;  %v5170_v5 = vpop.eup %3981  ;;  %v1536_v43 = vsub.f32 %v5741_v1, %v5123_v20 }
 0x3cc   : > { %v1471_v46 = vpop.xlane.xlu0 %1470  ;;  %v1477_v58 = vpop.xlane.xlu1 %1476 }
 0x3cd   : > { %v1541_v21 = vsub.f32 %v4935_v32, %v1477_v58  ;;  %3991 = vpow2.f32 %v1666_v41  ;;  %v1538_v35 = vsub.f32 %v4933_v40, %v1471_v46  ;;  %v5173_v40 = vpop.eup %3983  ;;  %v1630_v41 = vmul.f32 1.442695, %v1522_v51  ;;  %v5740_v46 = vld [vmem:[#allocation45_spill] sm:$0xff] }
 0x3ce   : > { %3993 = vpow2.f32 %v1634_v34  ;;  %v1523_v58 = vsub.f32 %v5740_v46, %v5097_v37  ;;  %v5179_v34 = vpop.eup %3985  ;;  %v1658_v37 = vmul.f32 1.442695, %v1536_v43  ;;  %v5746_v43 = vld [vmem:[#allocation41_spill] sm:$0xff] }
 0x3cf   : > { %v1668_v42 = vmul.f32 1.442695, %v1541_v21  ;;  %1674 = vadd.xlane.f32.xlu0 %v5164_v48  ;;  %1708 = vadd.xlane.f32.xlu1 %v5161_v39  ;;  %v1662_v32 = vmul.f32 1.442695, %v1538_v35  ;;  %v5183_v35 = vpop.eup %3987 }
 0x3d0   : > { %v1473_v30 = vpop.xlane.xlu1 %1472  ;;  %v1632_v57 = vmul.f32 1.442695, %v1523_v58  ;;  %v5189_v51 = vpop.eup %3989 }
 0x3d1   : > { %3995 = vpow2.f32 %v1668_v42  ;;  %v1539_v44 = vsub.f32 %v5739_v59, %v1473_v30  ;;  %v5742_v42 = vld [vmem:[#allocation40_spill] sm:$0xff] }
 0x3d2   : > { %3997 = vpow2.f32 %v1636_v23  ;;  %v1520_v30 = vsub.f32 %v5742_v42, %v5051_v54  ;;  %v5743_v23 = vld [vmem:[#allocation52_spill] sm:$0xff] }
 0x3d3   : > { %1702 = vadd.xlane.f32.xlu0 %v5170_v5  ;;  %1676 = vadd.xlane.f32.xlu1 %v5173_v40  ;;  %3999 = vpow2.f32 %v1662_v32  ;;  %v1664_v21 = vmul.f32 1.442695, %v1539_v44  ;;  %v1537_v59 = vsub.f32 %v5743_v23, %v5137_v45  ;;  %v5744_v44 = vld [vmem:[#allocation42_spill] sm:$0xff] }
 0x3d4   : > { %4001 = vpow2.f32 %v1630_v41  ;;  %v1626_v32 = vmul.f32 1.442695, %v1520_v30  ;;  %v1521_v46 = vsub.f32 %v5744_v44, %v5061_v56  ;;  %v5745_v41 = vld [vmem:[#allocation51_spill] sm:$0xff]  ;;  %v5749_v44 = vld [vmem:[#allocation46_spill] sm:$0xff] }
 0x3d5   : > { %4003 = vpow2.f32 %v1664_v21  ;;  %v1534_v58 = vsub.f32 %v5745_v41, %v5135_v0  ;;  %v1660_v1 = vmul.f32 1.442695, %v1537_v59  ;;  %v1518_v21 = vsub.f32 %v5746_v43, %v5059_v63  ;;  %v5748_v59 = vld [vmem:[#allocation43_spill] sm:$0xff] }
 0x3d6   : > { %4005 = vpow2.f32 %v1632_v57  ;;  %v1628_v42 = vmul.f32 1.442695, %v1521_v46  ;;  %v5747_v57 = vld [vmem:[#allocation53_spill] sm:$0xff]  ;;  %v1532_v46 = vsub.f32 %v5749_v44, %v5099_v3 }
 0x3d7   : > { %1670 = vadd.xlane.f32.xlu0 %v5179_v34  ;;  %1704 = vadd.xlane.f32.xlu1 %v5183_v35  ;;  %4007 = vpow2.f32 %v1658_v37  ;;  %v1654_v30 = vmul.f32 1.442695, %v1534_v58  ;;  %v1535_v37 = vsub.f32 %v5747_v57, %v5147_v8  ;;  %v1622_v23 = vmul.f32 1.442695, %v1518_v21  ;;  %v5750_v8 = vld [vmem:[#allocation36_spill] sm:$0xff] }
 0x3d8   : > { %4009 = vpow2.f32 %v1626_v32  ;;  %v1519_v32 = vsub.f32 %v5748_v59, %v5073_v2  ;;  %v1650_v2 = vmul.f32 1.442695, %v1532_v46  ;;  %v5754_v46 = vld [vmem:[#allocation37_spill] sm:$0xff] }
 0x3d9   : > { %4011 = vpow2.f32 %v1660_v1  ;;  %v1656_v41 = vmul.f32 1.442695, %v1535_v37  ;;  %v1516_v1 = vsub.f32 %v5750_v8, %v5029_v29  ;;  %v5752_v37 = vld [vmem:[#allocation38_spill] sm:$0xff] }
 0x3da   : > { %v5193_v20 = vpop.eup %3991  ;;  %4013 = vpow2.f32 %v1628_v42  ;;  %v1624_v43 = vmul.f32 1.442695, %v1519_v32  ;;  %v5751_v42 = vld [vmem:[#allocation48_spill] sm:$0xff]  ;;  %v1517_v59 = vsub.f32 %v5752_v37, %v5039_v36 }
 0x3db   : > { %1794 = vadd.xlane.f32.xlu0 %v5193_v20  ;;  %1672 = vadd.xlane.f32.xlu1 %v5189_v51  ;;  %v5199_v54 = vpop.eup %3993  ;;  %4015 = vpow2.f32 %v1654_v30  ;;  %v1533_v57 = vsub.f32 %v5751_v42, %v5111_v14  ;;  %v1618_v30 = vmul.f32 1.442695, %v1516_v1 }
 0x3dc   : > { %4017 = vpow2.f32 %v1622_v23  ;;  %v5753_v23 = vld [vmem:[#allocation47_spill] sm:$0xff]  ;;  %v1620_v8 = vmul.f32 1.442695, %v1517_v59 }
 0x3dd   : > { %4019 = vpow2.f32 %v1656_v41  ;;  %v1530_v32 = vsub.f32 %v5753_v23, %v5109_v47  ;;  %v1652_v44 = vmul.f32 1.442695, %v1533_v57  ;;  %v1514_v41 = vsub.f32 %v5754_v46, %v5037_v52  ;;  %v5759_v52 = vld [vmem:[#allocation39_spill] sm:$0xff] }
 0x3de   : > { %v5203_v45 = vpop.eup %3995  ;;  %4021 = vpow2.f32 %v1624_v43  ;;  %v5756_v43 = vld [vmem:[#allocation49_spill] sm:$0xff] }
 0x3df   : > { %1762 = vadd.xlane.f32.xlu0 %v5199_v54  ;;  %1796 = vadd.xlane.f32.xlu1 %v5203_v45  ;;  %v5209_v56 = vpop.eup %3997  ;;  %4023 = vpow2.f32 %v1650_v2  ;;  %v1646_v1 = vmul.f32 1.442695, %v1530_v32  ;;  %v1531_v2 = vsub.f32 %v5756_v43, %v5121_v62  ;;  %v1614_v42 = vmul.f32 1.442695, %v1514_v41 }
 0x3e0   : > { %v5213_v0 = vpop.eup %3999  ;;  %4025 = vpow2.f32 %v1618_v30  ;;  %v1515_v30 = vsub.f32 %v5759_v52, %v5049_v61 }
 0x3e1   : > { %v5219_v63 = vpop.eup %4001  ;;  %4027 = vpow2.f32 %v1652_v44  ;;  %v1648_v37 = vmul.f32 1.442695, %v1531_v2  ;;  %v5763_v44 = vmov 0.0  }
 0x3e2   : > { %v5223_v58 = vpop.eup %4003  ;;  %4029 = vpow2.f32 %v1620_v8  ;;  %v1616_v23 = vmul.f32 1.442695, %v1515_v30  ;;  %3678 = vmatprep.mubr.msk.bf16.mxu1 %vm4429_vm1, %v5763_v44  ;;  %3658 = vmatprep.mubr.msk.bf16.mxu0 %vm4429_vm1, %v5763_v44 }
 0x3e3   : > { %1790 = vadd.xlane.f32.xlu0 %v5213_v0  ;;  %1764 = vadd.xlane.f32.xlu1 %v5209_v56  ;;  %v5229_v21 = vpop.eup %4005  ;;  %4031 = vpow2.f32 %v1646_v1 }
 0x3e4   : > { %v5233_v3 = vpop.eup %4007  ;;  %4033 = vpow2.f32 %v1614_v42 }
 0x3e5   : > { %v5239_v29 = vpop.eup %4009  ;;  %4035 = vpow2.f32 %v1648_v37 }
 0x3e6   : > { %v5243_v14 = vpop.eup %4011  ;;  %4037 = vpow2.f32 %v1616_v23 }
 0x3e7   : > { %1758 = vadd.xlane.f32.xlu0 %v5219_v63  ;;  %1792 = vadd.xlane.f32.xlu1 %v5223_v58  ;;  %v5249_v36 = vpop.eup %4013 }
 0x3e8   : > { %5755 = vst [vmem:[#allocation44_spill] sm:$0xff] %v5249_v36  ;;  %v5253_v47 = vpop.eup %4015 }
 0x3e9   : > { %5757 = vst [vmem:[#allocation54_spill] sm:$0xff] %v5253_v47  ;;  %v5257_v57 = vpop.eup %4017 }
 0x3ea   : > { %5758 = vst [vmem:[#allocation45_spill] sm:$0xff] %v5257_v57  ;;  %v5261_v59 = vpop.eup %4019 }
 0x3eb   : > { %1786 = vadd.xlane.f32.xlu0 %v5233_v3  ;;  %1760 = vadd.xlane.f32.xlu1 %v5229_v21  ;;  %5760 = vst [vmem:[#allocation50_spill] sm:$0xff] %v5261_v59  ;;  %v5265_v62 = vpop.eup %4021 }
 0x3ec   : > { %5761 = vst [vmem:[#allocation40_spill] sm:$0xff] %v5265_v62  ;;  %v5267_v32 = vpop.eup %4023 }
 0x3ed   : > { %5762 = vst [vmem:[#allocation52_spill] sm:$0xff] %v5267_v32  ;;  %v5275_v46 = vpop.eup %4025 }
 0x3ee   : > { %5764 = vst [vmem:[#allocation42_spill] sm:$0xff] %v5275_v46  ;;  %v5277_v41 = vpop.eup %4027 }
 0x3ef   : > { %1754 = vadd.xlane.f32.xlu0 %v5239_v29  ;;  %1788 = vadd.xlane.f32.xlu1 %v5243_v14  ;;  %5765 = vst [vmem:[#allocation51_spill] sm:$0xff] %v5277_v41  ;;  %v5281_v1 = vpop.eup %4029 }
 0x3f0   : > { %5766 = vst [vmem:[#allocation41_spill] sm:$0xff] %v5281_v1  ;;  %v5283_v43 = vpop.eup %4031 }
 0x3f1   : > { %5767 = vst [vmem:[#allocation53_spill] sm:$0xff] %v5283_v43  ;;  %v5287_v42 = vpop.eup %4033 }
 0x3f2   : > { %5768 = vst [vmem:[#allocation43_spill] sm:$0xff] %v5287_v42  ;;  %v5289_v52 = vpop.eup %4035 }
 0x3f3   : > { %1782 = vadd.xlane.f32.xlu0 %v5253_v47  ;;  %1756 = vadd.xlane.f32.xlu1 %v5249_v36  ;;  %5769 = vst [vmem:[#allocation46_spill] sm:$0xff] %v5289_v52  ;;  %v5293_v23 = vpop.eup %4037 }
 0x3f4   : > { %5770 = vst [vmem:[#allocation36_spill] sm:$0xff] %v5293_v23 }
 0x3f7   : > { %1750 = vadd.xlane.f32.xlu0 %v5257_v57  ;;  %1784 = vadd.xlane.f32.xlu1 %v5261_v59  ;;  %v5773_v59 = vld [vmem:[#allocation56_spill] sm:$0xff] }
 0x3fb   : > { %1778 = vadd.xlane.f32.xlu0 %v5267_v32  ;;  %1752 = vadd.xlane.f32.xlu1 %v5265_v62  ;;  %v5771_v32 = vld [vmem:[#allocation55_spill] sm:$0xff] }
 0x3fc   : > { %v1691_v61 = vpop.xlane.xlu0 %1690 }
 0x3fd   : > { %4039 = vrcp.f32 %v1691_v61 }
 0x3ff   : > { %1746 = vadd.xlane.f32.xlu0 %v5275_v46  ;;  %1780 = vadd.xlane.f32.xlu1 %v5277_v41 }
 0x400   : > { %v1693_v8 = vpop.xlane.xlu1 %1692 }
 0x401   : > { %4041 = vrcp.f32 %v1693_v8 }
 0x403   : > { %1774 = vadd.xlane.f32.xlu0 %v5283_v43  ;;  %1748 = vadd.xlane.f32.xlu1 %v5281_v1 }
 0x404   : > { %v1699_v2 = vpop.xlane.xlu0 %1698 }
 0x405   : > { %4043 = vrcp.f32 %v1699_v2 }
 0x407   : > { %1742 = vadd.xlane.f32.xlu0 %v5287_v42  ;;  %1776 = vadd.xlane.f32.xlu1 %v5289_v52 }
 0x408   : > { %v1695_v30 = vpop.xlane.xlu0 %1694 }
 0x409   : > { %v1701_v37 = vpop.xlane.xlu1 %1700 }
 0x40a   : > { %4045 = vrcp.f32 %v1701_v37  ;;  %v4040_v61 = vpop.eup %4039 }
 0x40b   : > { %4047 = vrcp.f32 %v1695_v30  ;;  %1744 = vadd.xlane.f32.xlu1 %v5293_v23  ;;  %v1872_v1 = vmul.f32 %v4040_v61, %v4960_v13  ;;  %v5772_v30 = vld [vmem:[#allocation57_spill] sm:$0xff] }
 0x40d   : > { %v1697_v8 = vpop.xlane.xlu1 %1696 }
 0x40e   : > { %4049 = vrcp.f32 %v1697_v8  ;;  %v4042_v43 = vpop.eup %4041  ;;  %v5774_v8 = vld [vmem:[#allocation58_spill] sm:$0xff] }
 0x40f   : > { %v1873_v42 = vmul.f32 %v4042_v43, %v4963_v53 }
 0x411   : > { %v1931_v46 = vpack.c.bf16 %v1873_v42, %v1872_v1 }
 0x412   : > { %v4044_v2 = vpop.eup %4043 }
 0x413   : > { %3399 = vst [vmem:[%s4697_s7 + $0x28] sm:$0xff] %v1931_v46   ;;  %v1876_v37 = vmul.f32 %v4044_v2, %v5771_v32 }
 0x417   : > { %v4046_v52 = vpop.eup %4045 }
 0x418   : > { %v4048_v41 = vpop.eup %4047  ;;  %v1877_v62 = vmul.f32 %v4046_v52, %v5772_v30 }
 0x419   : > { %v1874_v47 = vmul.f32 %v4048_v41, %v5773_v59 }
 0x41a   : > { %v1933_v57 = vpack.c.bf16 %v1877_v62, %v1876_v37 }
 0x41b   : > { %v4050_v23 = vpop.eup %4049 }
 0x41c   : > { %v1875_v36 = vmul.f32 %v4050_v23, %v5774_v8  ;;  %3401 = vst [vmem:[%s4697_s7 + $0x38] sm:$0xff] %v1933_v57   ;;  %3643 = vmatpush3.bf16.xpose.msra.mxu0 %v1933_v57  ;;  %v1723_v13 = vpop.xlane.xlu0 %1722 }
 0x41d   : > { %3644 = vmatprep.subr.bf16.mxu0 %v5763_v44  ;;  %4051 = vrcp.f32 %v1723_v13 }
 0x41e   : > { %v1932_v53 = vpack.c.bf16 %v1875_v36, %v1874_v47 }
 0x420   : > { %3400 = vst [vmem:[%s4697_s7 + $0x30] sm:$0xff] %v1932_v53   ;;  %v1725_v1 = vpop.xlane.xlu1 %1724 }
 0x421   : > { %4053 = vrcp.f32 %v1725_v1 }
 0x424   : > { %3645 = vmatpush3.bf16.xpose.msra.mxu0 %v1932_v53  ;;  %v1731_v32 = vpop.xlane.xlu0 %1730 }
 0x425   : > { %3646 = vmatprep.subr.bf16.mxu0 %v5763_v44  ;;  %4055 = vrcp.f32 %v1731_v32 }
 0x428   : > { %v1451_v62 = vpop.xlane.xlu0 %1450  ;;  %v1733_v43 = vpop.xlane.xlu1 %1732 }
 0x429   : > { %v1528_v59 = vsub.f32 %v4891_v25, %v1451_v62  ;;  %4057 = vrcp.f32 %v1733_v43 }
 0x42a   : > { %v4052_v57 = vpop.eup %4051 }
 0x42b   : > { %v1642_v41 = vmul.f32 1.442695, %v1528_v59  ;;  %v1888_v61 = vmul.f32 %v4052_v57, %v4998_v18 }
 0x42c   : > { %3647 = vmatpush3.bf16.xpose.msra.mxu0 %v1931_v46  ;;  %v1727_v42 = vpop.xlane.xlu0 %1726  ;;  %v1453_v36 = vpop.xlane.xlu1 %1452 }
 0x42d   : > { %4059 = vpow2.f32 %v1642_v41  ;;  %v1529_v47 = vsub.f32 %v4897_v27, %v1453_v36  ;;  %3648 = vmatprep.subr.bf16.mxu0 %v5763_v44 }
 0x42e   : > { %v4054_v52 = vpop.eup %4053  ;;  %4061 = vrcp.f32 %v1727_v42 }
 0x42f   : > { %v1644_v23 = vmul.f32 1.442695, %v1529_v47  ;;  %v1889_v2 = vmul.f32 %v4054_v52, %v5005_v24 }
 0x430   : > { %v1719_v25 = vpop.xlane.xlu0 %1718  ;;  %v1729_v37 = vpop.xlane.xlu1 %1728 }
 0x431   : > { %4063 = vpow2.f32 %v1644_v23  ;;  %v5312_v30 = vpack.c.bf16 %v1889_v2, %v1888_v61 }
 0x432   : > { %4065 = vrcp.f32 %v1719_v25  ;;  %v4056_v46 = vpop.eup %4055 }
 0x433   : > { %4067 = vrcp.f32 %v1729_v37  ;;  %3407 = vst [vmem:[%s4697_s7 + $0x68] sm:$0xff] %v5312_v30   ;;  %v1892_v24 = vmul.f32 %v4056_v46, %v5014_v49  ;;  %v5775_v37 = vld [vmem:[#allocation60_spill] sm:$0xff] }
 0x434   : > { %v1419_v27 = vpop.xlane.xlu0 %1418  ;;  %v1721_v8 = vpop.xlane.xlu1 %1720 }
 0x435   : > { %v1512_v13 = vsub.f32 %v4843_v9, %v1419_v27  ;;  %4069 = vrcp.f32 %v1721_v8 }
 0x436   : > { %v4058_v18 = vpop.eup %4057 }
 0x437   : > { %v1610_v53 = vmul.f32 1.442695, %v1512_v13  ;;  %v1893_v1 = vmul.f32 %v4058_v18, %v5023_v15  ;;  %v5776_v13 = vld [vmem:[#allocation59_spill] sm:$0xff] }
 0x438   : > { %v1687_v32 = vpop.xlane.xlu0 %1686  ;;  %v1421_v62 = vpop.xlane.xlu1 %1420 }
 0x439   : > { %4071 = vpow2.f32 %v1610_v53  ;;  %v1513_v43 = vsub.f32 %v4849_v11, %v1421_v62  ;;  %v1941_v59 = vpack.c.bf16 %v1893_v1, %v1892_v24 }
 0x43a   : > { %v5320_v41 = vpop.eup %4059  ;;  %4073 = vrcp.f32 %v1687_v32 }
 0x43b   : > { %v1612_v57 = vmul.f32 1.442695, %v1513_v43  ;;  %1770 = vadd.xlane.f32.xlu0 %v5320_v41  ;;  %3409 = vst [vmem:[%s4697_s7 + $0x78] sm:$0xff] %v1941_v59   ;;  %3663 = vmatpush3.bf16.xpose.msra.mxu1 %v1941_v59  ;;  %v4062_v49 = vpop.eup %4061 }
 0x43c   : > { %v1447_v9 = vpop.xlane.xlu0 %1446  ;;  %v1689_v42 = vpop.xlane.xlu1 %1688  ;;  %3664 = vmatprep.subr.bf16.mxu1 %v5763_v44  ;;  %v1890_v25 = vmul.f32 %v4062_v49, %v5031_v19 }
 0x43d   : > { %4075 = vpow2.f32 %v1612_v57  ;;  %v1526_v15 = vsub.f32 %v4895_v26, %v1447_v9 }
 0x43e   : > { %v5326_v36 = vpop.eup %4063  ;;  %4077 = vrcp.f32 %v1689_v42 }
 0x43f   : > { %v4066_v11 = vpop.eup %4065  ;;  %v1638_v47 = vmul.f32 1.442695, %v1526_v15  ;;  %1772 = vadd.xlane.f32.xlu1 %v5326_v36 }
 0x440   : > { %v4068_v52 = vpop.eup %4067  ;;  %v1715_v23 = vpop.xlane.xlu0 %1714  ;;  %v1886_v18 = vmul.f32 %v4066_v11, %v5776_v13 }
 0x441   : > { %v1449_v61 = vpop.xlane.xlu1 %1448  ;;  %4079 = vpow2.f32 %v1638_v47  ;;  %v1891_v46 = vmul.f32 %v4068_v52, %v5775_v37 }
 0x442   : > { %v1527_v2 = vsub.f32 %v4901_v28, %v1449_v61  ;;  %v4070_v27 = vpop.eup %4069  ;;  %4081 = vrcp.f32 %v1715_v23 }
 0x443   : > { %v1940_v8 = vpack.c.bf16 %v1891_v46, %v1890_v25  ;;  %v1887_v53 = vmul.f32 %v4070_v27, %v5055_v31 }
 0x444   : > { %v1640_v26 = vmul.f32 1.442695, %v1527_v2  ;;  %v1415_v24 = vpop.xlane.xlu0 %1414 }
 0x445   : > { %v1717_v1 = vpop.xlane.xlu1 %1716  ;;  %3408 = vst [vmem:[%s4697_s7 + $0x70] sm:$0xff] %v1940_v8   ;;  %3665 = vmatpush3.bf16.xpose.msra.mxu1 %v1940_v8  ;;  %v1510_v28 = vsub.f32 %v4847_v10, %v1415_v24  ;;  %v1938_v32 = vpack.c.bf16 %v1887_v53, %v1886_v18 }
 0x446   : > { %4083 = vpow2.f32 %v1640_v26  ;;  %v5336_v19 = vpop.eup %4071  ;;  %3666 = vmatprep.subr.bf16.mxu1 %v5763_v44 }
 0x447   : > { %4085 = vrcp.f32 %v1717_v1  ;;  %v1606_v62 = vmul.f32 1.442695, %v1510_v28  ;;  %1738 = vadd.xlane.f32.xlu0 %v5336_v19  ;;  %3406 = vst [vmem:[%s4697_s7 + $0x60] sm:$0xff] %v1938_v32   ;;  %v4074_v59 = vpop.eup %4073 }
 0x448   : > { %v1683_v43 = vpop.xlane.xlu0 %1682  ;;  %v1870_v11 = vmul.f32 %v4074_v59, %v5069_v16 }
 0x449   : > { %v1417_v31 = vpop.xlane.xlu1 %1416  ;;  %4087 = vpow2.f32 %v1606_v62 }
 0x44a   : > { %v1511_v57 = vsub.f32 %v4853_v12, %v1417_v31  ;;  %v5342_v9 = vpop.eup %4075  ;;  %4089 = vrcp.f32 %v1683_v43 }
 0x44b   : > { %v4078_v42 = vpop.eup %4077  ;;  %1740 = vadd.xlane.f32.xlu1 %v5342_v9 }
 0x44c   : > { %v1608_v10 = vmul.f32 1.442695, %v1511_v57  ;;  %v1711_v49 = vpop.xlane.xlu0 %1710  ;;  %v1871_v47 = vmul.f32 %v4078_v42, %v5081_v17 }
 0x44d   : > { %v1685_v15 = vpop.xlane.xlu1 %1684  ;;  %3667 = vmatpush3.bf16.xpose.msra.mxu1 %v5312_v30 }
 0x44e   : > { %4091 = vpow2.f32 %v1608_v10  ;;  %v5348_v52 = vpop.eup %4079  ;;  %v1930_v12 = vpack.c.bf16 %v1871_v47, %v1870_v11  ;;  %3668 = vmatprep.subr.bf16.mxu1 %v5763_v44 }
 0x44f   : > { %4093 = vrcp.f32 %v1685_v15  ;;  %1766 = vadd.xlane.f32.xlu0 %v5348_v52  ;;  %v4082_v2 = vpop.eup %4081 }
 0x450   : > { %4095 = vrcp.f32 %v1711_v49  ;;  %3398 = vst [vmem:[%s4697_s7 + $0x20] sm:$0xff] %v1930_v12   ;;  %3649 = vmatpush3.bf16.xpose.msra.mxu0 %v1930_v12  ;;  %v1679_v23 = vpop.xlane.xlu0 %1678  ;;  %v1884_v37 = vmul.f32 %v4082_v2, %v5093_v22 }
 0x451   : > { %v1713_v61 = vpop.xlane.xlu1 %1712  ;;  %3650 = vmatprep.subr.bf16.mxu0 %v5763_v44 }
 0x452   : > { %4097 = vrcp.f32 %v1713_v61 }
 0x453   : > { %v5354_v16 = vpop.eup %4083  ;;  %4099 = vrcp.f32 %v1679_v23 }
 0x454   : > { %v4086_v17 = vpop.eup %4085  ;;  %1768 = vadd.xlane.f32.xlu1 %v5354_v16  ;;  %v1707_v30 = vpop.xlane.xlu0 %1706 }
 0x455   : > { %v1681_v25 = vpop.xlane.xlu1 %1680  ;;  %v1885_v46 = vmul.f32 %v4086_v17, %v5105_v55  ;;  %3669 = vmatpush3.bf16.xpose.msra.mxu1 %v1938_v32 }
 0x456   : > { %v5359_v27 = vpop.eup %4087  ;;  %4101 = vrcp.f32 %v1681_v25  ;;  %3670 = vmatprep.subr.bf16.mxu1 %v5763_v44 }
 0x457   : > { %v1937_v26 = vpack.c.bf16 %v1885_v46, %v1884_v37  ;;  %1734 = vadd.xlane.f32.xlu0 %v5359_v27  ;;  %4103 = vrcp.f32 %v1707_v30  ;;  %v4090_v18 = vpop.eup %4089 }
 0x458   : > { %v1675_v8 = vpop.xlane.xlu0 %1674  ;;  %v1868_v28 = vmul.f32 %v4090_v18, %v5117_v7 }
 0x459   : > { %v1709_v13 = vpop.xlane.xlu1 %1708  ;;  %3405 = vst [vmem:[%s4697_s7 + $0x58] sm:$0xff] %v1937_v26  }
 0x45a   : > { %4105 = vrcp.f32 %v1709_v13 }
 0x45b   : > { %v5364_v53 = vpop.eup %4091  ;;  %4107 = vrcp.f32 %v1675_v8 }
 0x45c   : > { %1736 = vadd.xlane.f32.xlu1 %v5364_v53  ;;  %v4094_v22 = vpop.eup %4093  ;;  %v1703_v55 = vpop.xlane.xlu0 %1702 }
 0x45d   : > { %v1677_v24 = vpop.xlane.xlu1 %1676  ;;  %v4096_v1 = vpop.eup %4095  ;;  %3671 = vmatpush3.bf16.xpose.msra.mxu1 %v1937_v26  ;;  %v1869_v32 = vmul.f32 %v4094_v22, %v5127_v6 }
 0x45e   : > { %4109 = vrcp.f32 %v1677_v24  ;;  %3672 = vmatprep.subr.bf16.mxu1 %v5763_v44  ;;  %v1882_v57 = vmul.f32 %v4096_v1, %v5131_v33 }
 0x45f   : > { %v4098_v62 = vpop.eup %4097  ;;  %v1929_v43 = vpack.c.bf16 %v1869_v32, %v1868_v28  ;;  %4111 = vrcp.f32 %v1703_v55 }
 0x460   : > { %v1671_v31 = vpop.xlane.xlu0 %1670  ;;  %v1883_v42 = vmul.f32 %v4098_v62, %v5143_v60  ;;  %v4100_v10 = vpop.eup %4099 }
 0x461   : > { %v1705_v59 = vpop.xlane.xlu1 %1704  ;;  %3397 = vst [vmem:[%s4697_s7 + $0x18] sm:$0xff] %v1929_v43   ;;  %3651 = vmatpush3.bf16.xpose.msra.mxu0 %v1929_v43  ;;  %v1866_v11 = vmul.f32 %v4100_v10, %v5141_v4 }
 0x462   : > { %4113 = vrcp.f32 %v1705_v59  ;;  %v1936_v7 = vpack.c.bf16 %v1883_v42, %v1882_v57  ;;  %3652 = vmatprep.subr.bf16.mxu0 %v5763_v44 }
 0x463   : > { %v4102_v6 = vpop.eup %4101  ;;  %4115 = vrcp.f32 %v1671_v31 }
 0x464   : > { %3404 = vst [vmem:[%s4697_s7 + $0x50] sm:$0xff] %v1936_v7   ;;  %v1795_v49 = vpop.xlane.xlu0 %1794  ;;  %v1867_v47 = vmul.f32 %v4102_v6, %v5152_v50  ;;  %v4104_v33 = vpop.eup %4103 }
 0x465   : > { %v1673_v15 = vpop.xlane.xlu1 %1672  ;;  %3673 = vmatpush3.bf16.xpose.msra.mxu1 %v1936_v7  ;;  %v1880_v2 = vmul.f32 %v4104_v33, %v5154_v38  ;;  %v3564_v38 = vpop.f32.mrf.mxu0 }
 0x466   : > { %4117 = vrcp.f32 %v1673_v15  ;;  %v1928_v60 = vpack.c.bf16 %v1867_v47, %v1866_v11  ;;  %3674 = vmatprep.subr.bf16.mxu1 %v5763_v44 }
 0x467   : > { %v4106_v12 = vpop.eup %4105  ;;  %4119 = vrcp.f32 %v1795_v49 }
 0x468   : > { %3396 = vst [vmem:[%s4697_s7 + $0x10] sm:$0xff] %v1928_v60   ;;  %v1763_v23 = vpop.xlane.xlu0 %1762  ;;  %v1881_v17 = vmul.f32 %v4106_v12, %v5161_v39  ;;  %v4108_v30 = vpop.eup %4107 }
 0x469   : > { %v1797_v61 = vpop.xlane.xlu1 %1796  ;;  %3653 = vmatpush3.bf16.xpose.msra.mxu0 %v1928_v60  ;;  %v1864_v46 = vmul.f32 %v4108_v30, %v5164_v48  ;;  %v3923_v30 = vld [vmem:[%s4693_s18] sm:$0xff]  }
 0x46a   : > { %4121 = vrcp.f32 %v1797_v61  ;;  %v1935_v4 = vpack.c.bf16 %v1881_v17, %v1880_v2  ;;  %3654 = vmatprep.subr.bf16.mxu0 %v5763_v44 }
 0x46b   : > { %v4110_v50 = vpop.eup %4109  ;;  %4123 = vrcp.f32 %v1763_v23 }
 0x46c   : > { %3403 = vst [vmem:[%s4697_s7 + $0x48] sm:$0xff] %v1935_v4   ;;  %v1791_v25 = vpop.xlane.xlu0 %1790  ;;  %v1865_v26 = vmul.f32 %v4110_v50, %v5173_v40  ;;  %v4112_v8 = vpop.eup %4111 }
 0x46d   : > { %v1765_v37 = vpop.xlane.xlu1 %1764  ;;  %3675 = vmatpush3.bf16.xpose.msra.mxu1 %v1935_v4  ;;  %v1878_v55 = vmul.f32 %v4112_v8, %v5170_v5  ;;  %v750_v40 = vpop.f32.mrf.mxu0 }
 0x46e   : > { %4125 = vrcp.f32 %v1765_v37  ;;  %v1927_v39 = vpack.c.bf16 %v1865_v26, %v1864_v46  ;;  %3676 = vmatprep.subr.bf16.mxu1 %v5763_v44  ;;  %v3924_v26 = vld [vmem:[%s4693_s18 + $0x8] sm:$0xff]  }
 0x46f   : > { %v4114_v13 = vpop.eup %4113  ;;  %4127 = vrcp.f32 %v1791_v25 }
 0x470   : > { %3395 = vst [vmem:[%s4697_s7 + $0x8] sm:$0xff] %v1927_v39   ;;  %v1759_v18 = vpop.xlane.xlu0 %1758  ;;  %v1879_v24 = vmul.f32 %v4114_v13, %v5183_v35  ;;  %v4116_v48 = vpop.eup %4115 }
 0x471   : > { %v1793_v22 = vpop.xlane.xlu1 %1792  ;;  %3655 = vmatpush3.bf16.xpose.msra.mxu0 %v1927_v39  ;;  %v1862_v43 = vmul.f32 %v4116_v48, %v5179_v34  ;;  %v3565_v35 = vpop.f32.mrf.mxu0 }
 0x472   : > { %4129 = vrcp.f32 %v1793_v22  ;;  %v1934_v1 = vpack.c.bf16 %v1879_v24, %v1878_v55  ;;  %3656 = vmatprep.subr.bf16.mxu0 %v5763_v44  ;;  %v798_v7 = vpack.c.bf16 %v3565_v35, %v3564_v38 }
 0x473   : > { %v4118_v28 = vpop.eup %4117  ;;  %4131 = vrcp.f32 %v1759_v18 }
 0x474   : > { %3402 = vst [vmem:[%s4697_s7 + $0x40] sm:$0xff] %v1934_v1   ;;  %v1787_v32 = vpop.xlane.xlu0 %1786  ;;  %v1863_v31 = vmul.f32 %v4118_v28, %v5189_v51  ;;  %v4120_v5 = vpop.eup %4119  ;;  %v5777_v28 = vld [vmem:[#allocation44_spill] sm:$0xff] }
 0x475   : > { %v1761_v62 = vpop.xlane.xlu1 %1760  ;;  %3677 = vmatpush3.bf16.xpose.msra.mxu1 %v1934_v1  ;;  %v1924_v6 = vmul.f32 %v4120_v5, %v5193_v20  ;;  %v753_v51 = vpop.f32.mrf.mxu0  ;;  %v5778_v5 = vld [vmem:[#allocation54_spill] sm:$0xff] }
 0x476   : > { %4133 = vrcp.f32 %v1761_v62  ;;  %v1926_v59 = vpack.c.bf16 %v1863_v31, %v1862_v43  ;;  %3702 = vmatprep.subr.bf16.mxu1 %v5763_v44  ;;  %v797_v60 = vpack.c.bf16 %v753_v51, %v750_v40 }
 0x477   : > { %v4122_v57 = vpop.eup %4121  ;;  %4135 = vrcp.f32 %v1787_v32 }
 0x478   : > { %3232 = vst [vmem:[%s4697_s7] sm:$0xff] %v1926_v59   ;;  %v1755_v42 = vpop.xlane.xlu0 %1754  ;;  %v1925_v34 = vmul.f32 %v4122_v57, %v5203_v45  ;;  %v4124_v49 = vpop.eup %4123 }
 0x479   : > { %v1789_v10 = vpop.xlane.xlu1 %1788  ;;  %3657 = vmatpush3.bf16.xpose.msra.mxu0 %v1926_v59  ;;  %v1908_v12 = vmul.f32 %v4124_v49, %v5199_v54  ;;  %v5779_v59 = vld [vmem:[#allocation50_spill] sm:$0xff]  ;;  %v5781_v49 = vld [vmem:[#allocation40_spill] sm:$0xff] }
 0x47a   : > { %4137 = vrcp.f32 %v1789_v10  ;;  %v1957_v15 = vpack.c.bf16 %v1925_v34, %v1924_v6  ;;  %3682 = vmatprep.subr.bf16.mxu0 %v5763_v44  ;;  %v5780_v6 = vld [vmem:[#allocation45_spill] sm:$0xff] }
 0x47b   : > { %v4126_v11 = vpop.eup %4125  ;;  %4139 = vrcp.f32 %v1755_v42 }
 0x47c   : > { %3679 = vmatmul.mubr.bf16.vlgmr.msra.gmra.mxu1 %v798_v7  ;;  %3425 = vst [vmem:[%s4697_s7 + $0xf8] sm:$0xff] %v1957_v15   ;;  %v1783_v47 = vpop.xlane.xlu0 %1782  ;;  %v1909_v20 = vmul.f32 %v4126_v11, %v5209_v56  ;;  %v4128_v45 = vpop.eup %4127 }
 0x47d   : > { %v1757_v33 = vpop.xlane.xlu1 %1756  ;;  %3703 = vmatpush3.bf16.xpose.msra.mxu1 %v1957_v15  ;;  %3718 = vmatprep.mubr.msk.bf16.mxu1 %vm4429_vm1, %v5763_v44  ;;  %v1922_v54 = vmul.f32 %v4128_v45, %v5213_v0 }
 0x47e   : > { %4141 = vrcp.f32 %v1757_v33  ;;  %v1949_v23 = vpack.c.bf16 %v1909_v20, %v1908_v12  ;;  %3704 = vmatprep.subr.bf16.mxu1 %v5763_v44  ;;  %v5782_v33 = vld [vmem:[#allocation52_spill] sm:$0xff]  ;;  %v5783_v12 = vld [vmem:[#allocation51_spill] sm:$0xff] }
 0x47f   : > { %v4130_v61 = vpop.eup %4129  ;;  %4143 = vrcp.f32 %v1783_v47 }
 0x480   : > { %3659 = vmatmul.mubr.bf16.vlgmr.msra.gmra.mxu0 %v797_v60  ;;  %3417 = vst [vmem:[%s4697_s7 + $0xb8] sm:$0xff] %v1949_v23   ;;  %v1751_v2 = vpop.xlane.xlu0 %1750  ;;  %v1923_v56 = vmul.f32 %v4130_v61, %v5223_v58  ;;  %v4132_v4 = vpop.eup %4131 }
 0x481   : > { %v1785_v17 = vpop.xlane.xlu1 %1784  ;;  %3683 = vmatpush3.bf16.xpose.msra.mxu0 %v1949_v23  ;;  %3698 = vmatprep.mubr.msk.bf16.mxu0 %vm4429_vm1, %v5763_v44  ;;  %v1906_v0 = vmul.f32 %v4132_v4, %v5219_v63 }
 0x482   : > { %4145 = vrcp.f32 %v1785_v17  ;;  %v1956_v50 = vpack.c.bf16 %v1923_v56, %v1922_v54  ;;  %3684 = vmatprep.subr.bf16.mxu0 %v5763_v44  ;;  %v5785_v54 = vld [vmem:[#allocation41_spill] sm:$0xff] }
 0x483   : > { %v4134_v25 = vpop.eup %4133  ;;  %4147 = vrcp.f32 %v1751_v2  ;;  %v5784_v2 = vld [vmem:[#allocation42_spill] sm:$0xff] }
 0x484   : > { %3424 = vst [vmem:[%s4697_s7 + $0xf0] sm:$0xff] %v1956_v50   ;;  %v1779_v37 = vpop.xlane.xlu0 %1778  ;;  %v1907_v58 = vmul.f32 %v4134_v25, %v5229_v21  ;;  %2462 = vxpose.xlu0.c.b16.start [1/4] (short) %v3923_v30, 128  ;;  %v4136_v8 = vpop.eup %4135 }
 0x485   : > { %v1753_v46 = vpop.xlane.xlu1 %1752  ;;  %3705 = vmatpush3.bf16.xpose.msra.mxu1 %v1956_v50  ;;  %v1920_v22 = vmul.f32 %v4136_v8, %v5233_v3 }
 0x486   : > { %4149 = vrcp.f32 %v1753_v46  ;;  %v1948_v38 = vpack.c.bf16 %v1907_v58, %v1906_v0  ;;  %3706 = vmatprep.subr.bf16.mxu1 %v5763_v44  ;;  %v5787_v0 = vld [vmem:[#allocation46_spill] sm:$0xff] }
 0x487   : > { %v4138_v39 = vpop.eup %4137  ;;  %4151 = vrcp.f32 %v1779_v37  ;;  %v5786_v37 = vld [vmem:[#allocation53_spill] sm:$0xff] }
 0x488   : > { %3416 = vst [vmem:[%s4697_s7 + $0xb0] sm:$0xff] %v1948_v38   ;;  %v1747_v13 = vpop.xlane.xlu0 %1746  ;;  %v1921_v63 = vmul.f32 %v4138_v39, %v5243_v14  ;;  %2463 = vxpose.xlu0.c.b16.cont [2/4] (short) %v3924_v26, 128  ;;  %v4140_v21 = vpop.eup %4139 }
 0x489   : > { %v1781_v18 = vpop.xlane.xlu1 %1780  ;;  %3685 = vmatpush3.bf16.xpose.msra.mxu0 %v1948_v38  ;;  %v1904_v1 = vmul.f32 %v4140_v21, %v5239_v29  ;;  %v5788_v38 = vld [vmem:[#allocation43_spill] sm:$0xff] }
 0x48a   : > { %4153 = vrcp.f32 %v1781_v18  ;;  %v1955_v55 = vpack.c.bf16 %v1921_v63, %v1920_v22  ;;  %3686 = vmatprep.subr.bf16.mxu0 %v5763_v44  ;;  %v3925_v63 = vld [vmem:[%s4693_s18 + $0x10] sm:$0xff]  }
 0x48b   : > { %v4142_v24 = vpop.eup %4141  ;;  %4155 = vrcp.f32 %v1747_v13  ;;  %v5789_v13 = vld [vmem:[#allocation36_spill] sm:$0xff] }
 0x48c   : > { %3423 = vst [vmem:[%s4697_s7 + $0xe8] sm:$0xff] %v1955_v55   ;;  %v1775_v48 = vpop.xlane.xlu0 %1774  ;;  %v1905_v32 = vmul.f32 %v4142_v24, %v5777_v28  ;;  %v4144_v3 = vpop.eup %4143  ;;  %2464 = vxpose.xlu0.c.b16.cont [3/4] (short) %v3925_v63, 128  ;;  %v2424_v63 = vld [vmem:[#allocation3 + $0x58] sm:$0xff] }
 0x48d   : > { %v1749_v40 = vpop.xlane.xlu1 %1748  ;;  %3707 = vmatpush3.bf16.xpose.msra.mxu1 %v1955_v55  ;;  %v1918_v35 = vmul.f32 %v4144_v3, %v5778_v5  ;;  %v3926_v55 = vld [vmem:[%s4693_s18 + $0x18] sm:$0xff]  }
 0x48e   : > { %4157 = vrcp.f32 %v1749_v40  ;;  %v1947_v14 = vpack.c.bf16 %v1905_v32, %v1904_v1  ;;  %3708 = vmatprep.subr.bf16.mxu1 %v5763_v44 }
 0x48f   : > { %v4146_v62 = vpop.eup %4145  ;;  %4159 = vrcp.f32 %v1775_v48 }
 0x490   : > { %3415 = vst [vmem:[%s4697_s7 + $0xa8] sm:$0xff] %v1947_v14   ;;  %v1743_v43 = vpop.xlane.xlu0 %1742  ;;  %v1919_v57 = vmul.f32 %v4146_v62, %v5779_v59  ;;  %v4148_v42 = vpop.eup %4147  ;;  %2465 = vxpose.xlu0.c.b16.end [4/4] (short) %v3926_v55, 128  ;;  %v2422_v55 = vld [vmem:[#allocation3 + $0x30] sm:$0xff] }
 0x491   : > { %v1777_v31 = vpop.xlane.xlu1 %1776  ;;  %3687 = vmatpush3.bf16.xpose.msra.mxu0 %v1947_v14  ;;  %v1902_v34 = vmul.f32 %v4148_v42, %v5780_v6 }
 0x492   : > { %4161 = vrcp.f32 %v1777_v31  ;;  %v1954_v29 = vpack.c.bf16 %v1919_v57, %v1918_v35  ;;  %3688 = vmatprep.subr.bf16.mxu0 %v5763_v44 }
 0x493   : > { %v4150_v10 = vpop.eup %4149  ;;  %4163 = vrcp.f32 %v1743_v43 }
 0x494   : > { %3422 = vst [vmem:[%s4697_s7 + $0xe0] sm:$0xff] %v1954_v29   ;;  %v1903_v51 = vmul.f32 %v4150_v10, %v5781_v49  ;;  %v4152_v15 = vpop.eup %4151 }
 0x495   : > { %v1745_v7 = vpop.xlane.xlu1 %1744  ;;  %3709 = vmatpush3.bf16.xpose.msra.mxu1 %v1954_v29  ;;  %v1916_v60 = vmul.f32 %v4152_v15, %v5782_v33  ;;  %v3568_v29 = vpop.f32.mrf.mxu0 }
 0x496   : > { %4165 = vrcp.f32 %v1745_v7  ;;  %v1946_v11 = vpack.c.bf16 %v1903_v51, %v1902_v34  ;;  %3710 = vmatprep.subr.bf16.mxu1 %v5763_v44 }
 0x497   : > { %v4154_v47 = vpop.eup %4153  ;;  %v766_v34 = vpop.f32.mrf.mxu0 }
 0x498   : > { %3414 = vst [vmem:[%s4697_s7 + $0xa0] sm:$0xff] %v1946_v11   ;;  %v1917_v20 = vmul.f32 %v4154_v47, %v5783_v12  ;;  %v4156_v45 = vpop.eup %4155 }
 0x499   : > { %3689 = vmatpush3.bf16.xpose.msra.mxu0 %v1946_v11  ;;  %v1900_v17 = vmul.f32 %v4156_v45, %v5784_v2 }
 0x49a   : > { %v1953_v23 = vpack.c.bf16 %v1917_v20, %v1916_v60  ;;  %3690 = vmatprep.subr.bf16.mxu0 %v5763_v44 }
 0x49b   : > { %v4158_v61 = vpop.eup %4157 }
 0x49c   : > { %3421 = vst [vmem:[%s4697_s7 + $0xd8] sm:$0xff] %v1953_v23   ;;  %v1901_v56 = vmul.f32 %v4158_v61, %v5785_v54  ;;  %v4160_v30 = vpop.eup %4159 }
 0x49d   : > { %3711 = vmatpush3.bf16.xpose.msra.mxu1 %v1953_v23  ;;  %v1914_v46 = vmul.f32 %v4160_v30, %v5786_v37 }
 0x49e   : > { %v1945_v4 = vpack.c.bf16 %v1901_v56, %v1900_v17  ;;  %3712 = vmatprep.subr.bf16.mxu1 %v5763_v44 }
 0x49f   : > { %v4162_v50 = vpop.eup %4161 }
 0x4a0   : > { %v4164_v25 = vpop.eup %4163  ;;  %3413 = vst [vmem:[%s4697_s7 + $0x98] sm:$0xff] %v1945_v4   ;;  %v1915_v58 = vmul.f32 %v4162_v50, %v5787_v0 }
 0x4a1   : > { %3691 = vmatpush3.bf16.xpose.msra.mxu0 %v1945_v4  ;;  %v1898_v39 = vmul.f32 %v4164_v25, %v5788_v38 }
 0x4a2   : > { %v1952_v8 = vpack.c.bf16 %v1915_v58, %v1914_v46  ;;  %3692 = vmatprep.subr.bf16.mxu0 %v5763_v44 }
 0x4a3   : > { %v4166_v26 = vpop.eup %4165 }
 0x4a4   : > { %v1899_v18 = vmul.f32 %v4166_v26, %v5789_v13  ;;  %3420 = vst [vmem:[%s4697_s7 + $0xd0] sm:$0xff] %v1952_v8  }
 0x4a5   : > { %3713 = vmatpush3.bf16.xpose.msra.mxu1 %v1952_v8 }
 0x4a6   : > { %v1944_v22 = vpack.c.bf16 %v1899_v18, %v1898_v39  ;;  %3714 = vmatprep.subr.bf16.mxu1 %v5763_v44 }
 0x4a8   : > { %3412 = vst [vmem:[%s4697_s7 + $0x90] sm:$0xff] %v1944_v22  }
 0x4a9   : > { %3693 = vmatpush3.bf16.xpose.msra.mxu0 %v1944_v22 }
 0x4aa   : > { %3694 = vmatprep.subr.bf16.mxu0 %v5763_v44 }
 0x4c4   : > { %v1771_v21 = vpop.xlane.xlu0 %1770 }
 0x4c5   : > { %4167 = vrcp.f32 %v1771_v21 }
 0x4c8   : > { %v1773_v24 = vpop.xlane.xlu1 %1772 }
 0x4c9   : > { %4169 = vrcp.f32 %v1773_v24 }
 0x4d0   : > { %v1739_v48 = vpop.xlane.xlu0 %1738 }
 0x4d1   : > { %4171 = vrcp.f32 %v1739_v48 }
 0x4d2   : > { %v4168_v40 = vpop.eup %4167 }
 0x4d3   : > { %v1912_v32 = vmul.f32 %v4168_v40, %v5320_v41  ;;  %v2425_v40 = vld [vmem:[#allocation3 + $0x18] sm:$0xff] }
 0x4d4   : > { %v1741_v1 = vpop.xlane.xlu1 %1740 }
 0x4d5   : > { %4173 = vrcp.f32 %v1741_v1 }
 0x4d6   : > { %v4170_v28 = vpop.eup %4169 }
 0x4d7   : > { %v1913_v3 = vmul.f32 %v4170_v28, %v5326_v36 }
 0x4d8   : > { %v1767_v14 = vpop.xlane.xlu0 %1766 }
 0x4d9   : > { %v1951_v62 = vpack.c.bf16 %v1913_v3, %v1912_v32  ;;  %4175 = vrcp.f32 %v1767_v14  ;;  %v2423_v32 = vld [vmem:[#allocation3] sm:$0xff] }
 0x4db   : > { %3419 = vst [vmem:[%s4697_s7 + $0xc8] sm:$0xff] %v1951_v62   ;;  %3715 = vmatpush3.bf16.xpose.msra.mxu1 %v1951_v62  ;;  %v2428_v62 = vld [vmem:[#allocation3 + $0x8] sm:$0xff] }
 0x4dc   : > { %3716 = vmatprep.subr.bf16.mxu1 %v5763_v44 }
 0x4dd   : > { %v1769_v43 = vpop.xlane.xlu1 %1768 }
 0x4de   : > { %4177 = vrcp.f32 %v1769_v43  ;;  %v4172_v31 = vpop.eup %4171 }
 0x4df   : > { %v1896_v59 = vmul.f32 %v4172_v31, %v5336_v19 }
 0x4e0   : > { %v1735_v5 = vpop.xlane.xlu0 %1734 }
 0x4e1   : > { %4179 = vrcp.f32 %v1735_v5  ;;  %v2426_v5 = vld [vmem:[#allocation3 + $0x50] sm:$0xff] }
 0x4e2   : > { %v4174_v35 = vpop.eup %4173 }
 0x4e3   : > { %v1897_v41 = vmul.f32 %v4174_v35, %v5342_v9  ;;  %v3569_v9 = vpop.f32.mrf.mxu0 }
 0x4e4   : > { %v800_v15 = vpack.c.bf16 %v3569_v9, %v3568_v29 }
 0x4e5   : > { %v1737_v36 = vpop.xlane.xlu1 %1736  ;;  %v1943_v57 = vpack.c.bf16 %v1897_v41, %v1896_v59  ;;  %v769_v33 = vpop.f32.mrf.mxu0  ;;  %v2429_v41 = vld [vmem:[#allocation3 + $0x48] sm:$0xff] }
 0x4e6   : > { %4181 = vrcp.f32 %v1737_v36  ;;  %v4176_v42 = vpop.eup %4175 }
 0x4e7   : > { %3411 = vst [vmem:[%s4697_s7 + $0x88] sm:$0xff] %v1943_v57   ;;  %3695 = vmatpush3.bf16.xpose.msra.mxu0 %v1943_v57  ;;  %v1910_v7 = vmul.f32 %v4176_v42, %v5348_v52  ;;  %v799_v52 = vpack.c.bf16 %v769_v33, %v766_v34  ;;  %v2427_v42 = vld [vmem:[#allocation3 + $0x68] sm:$0xff] }
 0x4e8   : > { %3696 = vmatprep.subr.bf16.mxu0 %v5763_v44 }
 0x4eb   : > { %v4178_v10 = vpop.eup %4177 }
 0x4ec   : > { %v1911_v6 = vmul.f32 %v4178_v10, %v5354_v16 }
 0x4ee   : > { %v1950_v49 = vpack.c.bf16 %v1911_v6, %v1910_v7  ;;  %v4180_v19 = vpop.eup %4179  ;;  %v2432_v7 = vld [vmem:[#allocation3 + $0x10] sm:$0xff] }
 0x4ef   : > { %v1894_v11 = vmul.f32 %v4180_v19, %v5359_v27  ;;  %v2470_v27 = vpop.trf.xlu0 }
 0x4f0   : > { %3418 = vst [vmem:[%s4697_s7 + $0xc0] sm:$0xff] %v1950_v49   ;;  %3717 = vmatpush3.bf16.xpose.msra.mxu1 %v1950_v49  ;;  %v2430_v49 = vld [vmem:[#allocation3 + $0x40] sm:$0xff] }
 0x4f3   : > { %v4182_v51 = vpop.eup %4181  ;;  %v2471_v46 = vpop.trf.xlu0 }
 0x4f4   : > { %v1895_v47 = vmul.f32 %v4182_v51, %v5364_v53  ;;  %v2433_v51 = vld [vmem:[#allocation3 + $0x38] sm:$0xff] }
 0x4f6   : > { %v1942_v44 = vpack.c.bf16 %v1895_v47, %v1894_v11  ;;  %v2431_v47 = vld [vmem:[#allocation3 + $0x20] sm:$0xff] }
 0x4f7   : > { %3719 = vmatmul.mubr.bf16.vlgmr.msra.gmra.mxu1 %v800_v15  ;;  %v2472_v8 = vpop.trf.xlu0 }
 0x4f8   : > { %3410 = vst [vmem:[%s4697_s7 + $0x80] sm:$0xff] %v1942_v44   ;;  %3697 = vmatpush3.bf16.xpose.msra.mxu0 %v1942_v44 }
 0x4fb   : > { %v2473_v38 = vpop.trf.xlu0 }
 0x4ff   : > { %3699 = vmatmul.mubr.bf16.vlgmr.msra.gmra.mxu0 %v799_v52  ;;  %v2474_v39 = vpop.trf.xlu0  ;;  %v2436_v52 = vld [vmem:[#allocation3 + $0x78] sm:$0xff] }
 0x500   : > { %3730 = vmatprep.mubr.msk.bf16.mxu0 %vm2478_vm2, %v2470_v27 }
 0x503   : > { %v2475_v13 = vpop.trf.xlu0 }
 0x507   : > { %v2476_v18 = vpop.trf.xlu0 }
 0x50b   : > { %v2477_v22 = vpop.trf.xlu0 }
 0x53c   : > { %v2321_v16 = vpop.f32.mrf.mxu1 }
 0x53e   : > { %v3680_v60 = vpop.f32.mrf.mxu1 }
 0x540   : > { %v2280_v12 = vpop.f32.mrf.mxu0  ;;  %v2324_v20 = vpop.f32.mrf.mxu1 }
 0x541   : > { %v2411_v45 = vpack.c.bf16 %v2324_v20, %v2321_v16 }
 0x542   : > { %v3660_v23 = vpop.f32.mrf.mxu0  ;;  %v3681_v61 = vpop.f32.mrf.mxu1 }
 0x543   : > { %v2437_v23 = vld [vmem:[#allocation3 + $0x28] sm:$0xff] }
 0x544   : > { %v2283_v2 = vpop.f32.mrf.mxu0 }
 0x545   : > { %v2410_v17 = vpack.c.bf16 %v2283_v2, %v2280_v12  ;;  %v2434_v12 = vld [vmem:[#allocation3 + $0x60] sm:$0xff] }
 0x546   : > { %v3661_v54 = vpop.f32.mrf.mxu0 }
 0x5b7   : > { %v2403_v53 = vpop.f32.mrf.mxu1 }
 0x5b9   : > { %v3720_v56 = vpop.f32.mrf.mxu1 }
 0x5bb   : > { %v2406_v30 = vpop.f32.mrf.mxu1 }
 0x5bc   : > { %v2413_v4 = vpack.c.bf16 %v2406_v30, %v2403_v53 }
 0x5bd   : > { %v3721_v50 = vpop.f32.mrf.mxu1 }
 0x5be   : > { %3722 = vmatprep.subr.bf16.mxu0 %v2413_v4 }
 0x5bf   : > { %v2362_v25 = vpop.f32.mrf.mxu0  ;;  %3723 = vmatpush3.bf16.msra.mxu0 %v2413_v4 }
 0x5c1   : > { %v3700_v37 = vpop.f32.mrf.mxu0 }
 0x5c3   : > { %v2365_v0 = vpop.f32.mrf.mxu0 }
 0x5c4   : > { %v2412_v58 = vpack.c.bf16 %v2365_v0, %v2362_v25 }
 0x5c5   : > { %v3701_v26 = vpop.f32.mrf.mxu0 }
 0x5c6   : > { %3724 = vmatprep.subr.bf16.mxu0 %v2412_v58 }
 0x5c7   : > { %3725 = vmatpush3.bf16.msra.mxu0 %v2412_v58 }
 0x5c8   : > { %3726 = vmatprep.subr.bf16.mxu0 %v2411_v45 }
 0x5cb   : > { %3727 = vmatpush3.bf16.msra.mxu0 %v2411_v45 }
 0x5cc   : > { %3728 = vmatprep.subr.bf16.mxu0 %v2410_v17 }
 0x5cf   : > { %3729 = vmatpush3.bf16.msra.mxu0 %v2410_v17  ;;  %v2435_v17 = vld [vmem:[#allocation3 + $0x70] sm:$0xff] }
 0x5d2   : > { %3731 = vmatmul.mubr.msk.bf16.vlgmr.msra.gmra.mxu0 %vm2478_vm2, %v2471_v46 }
 0x5d3   : > { %3734 = vmatprep.mubr.msk.bf16.mxu0 %vm2478_vm2, %v2472_v8 }
 0x5da   : > { %3735 = vmatmul.mubr.msk.bf16.gmra.mxu0 %vm2478_vm2, %v2473_v38 }
 0x5db   : > { %3738 = vmatprep.mubr.msk.bf16.mxu0 %vm2478_vm2, %v2474_v39 }
 0x5e2   : > { %3739 = vmatmul.mubr.msk.bf16.gmra.mxu0 %vm2478_vm2, %v2475_v13 }
 0x5e3   : > { %3742 = vmatprep.mubr.msk.bf16.mxu0 %vm2478_vm2, %v2476_v18 }
 0x5ea   : > { %3743 = vmatmul.mubr.msk.bf16.gmra.mxu0 %vm2478_vm2, %v2477_v22 }
 0x692   : > { %v3732_v21 = vpop.f32.mrf.mxu0 }
 0x693   : > { %v2602_v24 = vadd.f32 %v3732_v21, %v2424_v63 }
 0x694   : > { %v2537_v48 = vpop.f32.mrf.mxu0 }
 0x695   : > { %2618 = vst [vmem:[#allocation3 + $0x58] sm:$0xff] %v2602_v24  ;;  %v2600_v1 = vadd.f32 %v2537_v48, %v2422_v55 }
 0x696   : > { %v3733_v28 = vpop.f32.mrf.mxu0 }
 0x697   : > { %2616 = vst [vmem:[#allocation3 + $0x30] sm:$0xff] %v2600_v1  ;;  %v2603_v3 = vadd.f32 %v3733_v28, %v2425_v40 }
 0x698   : > { %v2540_v14 = vpop.f32.mrf.mxu0 }
 0x699   : > { %2619 = vst [vmem:[#allocation3 + $0x18] sm:$0xff] %v2603_v3  ;;  %v2601_v43 = vadd.f32 %v2540_v14, %v2423_v32 }
 0x69a   : > { %v3736_v31 = vpop.f32.mrf.mxu0 }
 0x69b   : > { %2617 = vst [vmem:[#allocation3] sm:$0xff] %v2601_v43  ;;  %v2606_v35 = vadd.f32 %v3736_v31, %v2428_v62 }
 0x69c   : > { %v2553_v59 = vpop.f32.mrf.mxu0 }
 0x69d   : > { %2622 = vst [vmem:[#allocation3 + $0x8] sm:$0xff] %v2606_v35  ;;  %v2604_v36 = vadd.f32 %v2553_v59, %v2426_v5 }
 0x69e   : > { %v3737_v57 = vpop.f32.mrf.mxu0 }
 0x69f   : > { %2620 = vst [vmem:[#allocation3 + $0x50] sm:$0xff] %v2604_v36  ;;  %v2607_v29 = vadd.f32 %v3737_v57, %v2429_v41 }
 0x6a0   : > { %v2556_v10 = vpop.f32.mrf.mxu0 }
 0x6a1   : > { %2623 = vst [vmem:[#allocation3 + $0x48] sm:$0xff] %v2607_v29  ;;  %v2605_v6 = vadd.f32 %v2556_v10, %v2427_v42 }
 0x6a2   : > { %v3740_v34 = vpop.f32.mrf.mxu0 }
 0x6a3   : > { %2621 = vst [vmem:[#allocation3 + $0x68] sm:$0xff] %v2605_v6  ;;  %v2610_v19 = vadd.f32 %v3740_v34, %v2432_v7 }
 0x6a4   : > { %v2569_v9 = vpop.f32.mrf.mxu0 }
 0x6a5   : > { %2626 = vst [vmem:[#allocation3 + $0x10] sm:$0xff] %v2610_v19  ;;  %v2608_v15 = vadd.f32 %v2569_v9, %v2430_v49 }
 0x6a6   : > { %v3741_v11 = vpop.f32.mrf.mxu0 }
 0x6a7   : > { %2624 = vst [vmem:[#allocation3 + $0x40] sm:$0xff] %v2608_v15  ;;  %v2611_v44 = vadd.f32 %v3741_v11, %v2433_v51 }
 0x6a8   : > { %v2572_v33 = vpop.f32.mrf.mxu0 }
 0x6a9   : > { %2627 = vst [vmem:[#allocation3 + $0x38] sm:$0xff] %v2611_v44  ;;  %v2609_v16 = vadd.f32 %v2572_v33, %v2431_v47 }
 0x6aa   : > { %v3744_v60 = vpop.f32.mrf.mxu0 }
 0x6ab   : > { %2625 = vst [vmem:[#allocation3 + $0x20] sm:$0xff] %v2609_v16  ;;  %v2614_v20 = vadd.f32 %v3744_v60, %v2436_v52 }
 0x6ac   : > { %v2585_v45 = vpop.f32.mrf.mxu0 }
 0x6ad   : > { %2630 = vst [vmem:[#allocation3 + $0x78] sm:$0xff] %v2614_v20  ;;  %v2612_v61 = vadd.f32 %v2585_v45, %v2434_v12 }
 0x6ae   : > { %v3745_v2 = vpop.f32.mrf.mxu0 }
 0x6af   : > { %2628 = vst [vmem:[#allocation3 + $0x60] sm:$0xff] %v2612_v61  ;;  %v2615_v54 = vadd.f32 %v3745_v2, %v2437_v23  ;;  %2635 = sbr.rel (%p3089_p5) target bundleno = 1905 (0x771), region = 56 }
 0x6b0   : > { %v2588_v27 = vpop.f32.mrf.mxu0 }
 0x6b1   : > { %2631 = vst [vmem:[#allocation3 + $0x28] sm:$0xff] %v2615_v54  ;;  %v2613_v53 = vadd.f32 %v2588_v27, %v2435_v17 }
 0x6b3   : > { %2629 = vst [vmem:[#allocation3 + $0x70] sm:$0xff] %v2613_v53 }
 0x6b4   : > { %v2636_v56 = vld [vmem:[#allocation3 + $0x30] sm:$0xff]  ;;  %v2637_v30 = vld [vmem:[#allocation3] sm:$0xff]  ;;  %v2638_v4 = vld [vmem:[#allocation3 + $0x58] sm:$0xff] }
 0x6b5   : > { %2652 = vxpose.xlu0.b32.start [1/16] %v2636_v56, 128  ;;  %v2639_v50 = vld [vmem:[#allocation3 + $0x18] sm:$0xff]  ;;  %v2640_v25 = vld [vmem:[#allocation3 + $0x50] sm:$0xff]  ;;  %v2641_v37 = vld [vmem:[#allocation3 + $0x68] sm:$0xff] }
 0x6b6   : > { %v2642_v46 = vld [vmem:[#allocation3 + $0x8] sm:$0xff]  ;;  %v2644_v58 = vld [vmem:[#allocation3 + $0x40] sm:$0xff]  ;;  %v2646_v8 = vld [vmem:[#allocation3 + $0x10] sm:$0xff] }
 0x6b7   : > { %v2643_v0 = vld [vmem:[#allocation3 + $0x48] sm:$0xff]  ;;  %v2645_v26 = vld [vmem:[#allocation3 + $0x20] sm:$0xff]  ;;  %v2647_v38 = vld [vmem:[#allocation3 + $0x38] sm:$0xff] }
 0x6b8   : > { %v2648_v39 = vld [vmem:[#allocation3 + $0x60] sm:$0xff]  ;;  %v2650_v18 = vld [vmem:[#allocation3 + $0x78] sm:$0xff]  ;;  %v2651_v22 = vld [vmem:[#allocation3 + $0x28] sm:$0xff] }
 0x6b9   : > { %2653 = vxpose.xlu0.b32.cont [2/16] %v2637_v30, 128  ;;  %v3090_v63 = vld [vmem:[%s5619_s3] ss:$0 sm:$0xff] }
 0x6ba   : > { %v2649_v13 = vld [vmem:[#allocation3 + $0x70] sm:$0xff] }
 0x6bd   : > { %2654 = vxpose.xlu0.b32.cont [3/16] %v2638_v4, 128 }
 0x6c1   : > { %2655 = vxpose.xlu0.b32.cont [4/16] %v2639_v50, 128 }
 0x6c5   : > { %2656 = vxpose.xlu0.b32.cont [5/16] %v2640_v25, 128 }
 0x6c9   : > { %2657 = vxpose.xlu0.b32.cont [6/16] %v2641_v37, 128 }
 0x6cd   : > { %2658 = vxpose.xlu0.b32.cont [7/16] %v2642_v46, 128 }
 0x6d1   : > { %2659 = vxpose.xlu0.b32.cont [8/16] %v2643_v0, 128 }
 0x6d5   : > { %2660 = vxpose.xlu0.b32.cont [9/16] %v2644_v58, 128 }
 0x6d9   : > { %2661 = vxpose.xlu0.b32.cont [10/16] %v2645_v26, 128 }
 0x6dd   : > { %2662 = vxpose.xlu0.b32.cont [11/16] %v2646_v8, 128 }
 0x6e1   : > { %2663 = vxpose.xlu0.b32.cont [12/16] %v2647_v38, 128 }
 0x6e5   : > { %2664 = vxpose.xlu0.b32.cont [13/16] %v2648_v39, 128 }
 0x6e9   : > { %2665 = vxpose.xlu0.b32.cont [14/16] %v2649_v13, 128 }
 0x6ed   : > { %2666 = vxpose.xlu0.b32.cont [15/16] %v2650_v18, 128 }
 0x6f1   : > { %2667 = vxpose.xlu0.b32.end [16/16] %v2651_v22, 128 }
 0x731   : > { %v2668_v21 = vpop.trf.xlu0 }
 0x732   : > { %v2691_v55 = vadd.f32 %v3090_v63, %v2668_v21 }
 0x734   : > { %2707 = vst [vmem:[%s4695_s14] sm:$0xff] %v2691_v55 }
 0x735   : > { %v2669_v24 = vpop.trf.xlu0 }
 0x736   : > { %v2692_v48 = vadd.f32 %v3090_v63, %v2669_v24 }
 0x738   : > { %2708 = vst [vmem:[%s4695_s14 + $0x8] sm:$0xff] %v2692_v48 }
 0x739   : > { %v2670_v40 = vpop.trf.xlu0 }
 0x73a   : > { %v2693_v1 = vadd.f32 %v3090_v63, %v2670_v40 }
 0x73c   : > { %2709 = vst [vmem:[%s4695_s14 + $0x10] sm:$0xff] %v2693_v1 }
 0x73d   : > { %v2671_v28 = vpop.trf.xlu0 }
 0x73e   : > { %v2694_v32 = vadd.f32 %v3090_v63, %v2671_v28 }
 0x740   : > { %2710 = vst [vmem:[%s4695_s14 + $0x18] sm:$0xff] %v2694_v32 }
 0x741   : > { %v2672_v3 = vpop.trf.xlu0 }
 0x742   : > { %v2695_v14 = vadd.f32 %v3090_v63, %v2672_v3 }
 0x744   : > { %2711 = vst [vmem:[%s4695_s14 + $0x20] sm:$0xff] %v2695_v14 }
 0x745   : > { %v2673_v62 = vpop.trf.xlu0 }
 0x746   : > { %v2696_v43 = vadd.f32 %v3090_v63, %v2673_v62 }
 0x748   : > { %2712 = vst [vmem:[%s4695_s14 + $0x28] sm:$0xff] %v2696_v43 }
 0x749   : > { %v2674_v31 = vpop.trf.xlu0 }
 0x74a   : > { %v2697_v5 = vadd.f32 %v3090_v63, %v2674_v31 }
 0x74c   : > { %2713 = vst [vmem:[%s4695_s14 + $0x30] sm:$0xff] %v2697_v5 }
 0x74d   : > { %v2675_v35 = vpop.trf.xlu0 }
 0x74e   : > { %v2698_v59 = vadd.f32 %v3090_v63, %v2675_v35 }
 0x750   : > { %2714 = vst [vmem:[%s4695_s14 + $0x38] sm:$0xff] %v2698_v59 }
 0x751   : > { %v2676_v41 = vpop.trf.xlu0 }
 0x752   : > { %v2699_v36 = vadd.f32 %v3090_v63, %v2676_v41 }
 0x754   : > { %2715 = vst [vmem:[%s4695_s14 + $0x40] sm:$0xff] %v2699_v36 }
 0x755   : > { %v2677_v57 = vpop.trf.xlu0 }
 0x756   : > { %v2700_v42 = vadd.f32 %v3090_v63, %v2677_v57 }
 0x758   : > { %2716 = vst [vmem:[%s4695_s14 + $0x48] sm:$0xff] %v2700_v42 }
 0x759   : > { %v2678_v29 = vpop.trf.xlu0 }
 0x75a   : > { %v2701_v10 = vadd.f32 %v3090_v63, %v2678_v29 }
 0x75c   : > { %2717 = vst [vmem:[%s4695_s14 + $0x50] sm:$0xff] %v2701_v10 }
 0x75d   : > { %v2679_v7 = vpop.trf.xlu0 }
 0x75e   : > { %v2702_v6 = vadd.f32 %v3090_v63, %v2679_v7 }
 0x760   : > { %2718 = vst [vmem:[%s4695_s14 + $0x58] sm:$0xff] %v2702_v6 }
 0x761   : > { %v2680_v34 = vpop.trf.xlu0 }
 0x762   : > { %v2703_v49 = vadd.f32 %v3090_v63, %v2680_v34 }
 0x764   : > { %2719 = vst [vmem:[%s4695_s14 + $0x60] sm:$0xff] %v2703_v49 }
 0x765   : > { %v2681_v19 = vpop.trf.xlu0 }
 0x766   : > { %v2704_v9 = vadd.f32 %v3090_v63, %v2681_v19 }
 0x768   : > { %2720 = vst [vmem:[%s4695_s14 + $0x68] sm:$0xff] %v2704_v9 }
 0x769   : > { %v2682_v51 = vpop.trf.xlu0 }
 0x76a   : > { %v2705_v15 = vadd.f32 %v3090_v63, %v2682_v51 }
 0x76c   : > { %2721 = vst [vmem:[%s4695_s14 + $0x70] sm:$0xff] %v2705_v15 }
 0x76d   : > { %v2683_v11 = vpop.trf.xlu0 }
 0x76e   : > { %v2706_v47 = vadd.f32 %v3090_v63, %v2683_v11 }
 0x770   : > { %2722 = vst [vmem:[%s4695_s14 + $0x78] sm:$0xff] %v2706_v47 }
 0x771 PF: > { %s5790_s10 = sld [smem:[#allocation24_spill]]  ;;  %s2742_s24 = sshll.u32 %s4695_s14, 4  ;;  %s5501_s24 = int_to_ptr.vmem [resolvable:$true] %s2742_s24 }
 0x772   : > { %s5792_s8 = sld [smem:[#allocation63_spill]]  ;;  %s2724_s12 = scalar_lea.sflag [#allocation6], %s4672_s30 }
 0x773   : > { %s4235_s5 = scalar_lea.vmem %s5501_s24, 2048  ;;  %s4430_s29 = smov [#allocation10]  }
 0x774   : > { %p4236_p8 = scmp.ne.s32.totalorder %s5501_s24, %s4235_s5  ;;  %s4239_s28 = sshll.u32 %s4430_s29, 4  ;;  %s4240_s28 = int_to_ptr.vmem [resolvable:$false] %s4239_s28 }
 0x775   : > { %s4241_s13 = scalar_lea.vmem %s4240_s28, 4096  ;;  %p4242_p6 = scmp.lt.s32.totalorder %s5501_s24, %s4240_s28 }
 0x776   : > { %p4237_p2 = pnand %p4236_p8, %p4604_p4  ;;  %p4243_p1 = scmp.lt.s32.totalorder %s4241_s13, %s4235_s5 }
 0x777   : > { %s3186_s11 = sshll.u32 %s5790_s10, 11 }
 0x778   : > { %s5498_s26 = scalar_lea.hbm %s5792_s8, %s3186_s11  ;;  %p4238_p9 = pneg %p4237_p2 }
 0x779   : > { %p4244_p3 = por %p4243_p1, %p4242_p6 }
 0x77b   : > { %p4245_p0 = pnand %p4244_p3, %p4238_p9 }
 0x77d   : > { %4248 = shalt.err (!%p4245_p0)
}
 0x77e   : > { %s4249_s16 = scalar_lea.hbm %s5498_s26, 2048  ;;  %s4253_s18 = scalar_lea.hbm %s5792_s8, 4096 }
 0x77f   : > { %p4250_p12 = scmp.ne.s32.totalorder %s5498_s26, %s4249_s16  ;;  %p4254_p8 = scmp.lt.s32.totalorder %s5498_s26, %s5792_s8 }
 0x780   : > { %p4255_p2 = scmp.lt.s32.totalorder %s4253_s18, %s4249_s16 }
 0x781   : > { %p4251_p7 = pnand %p4250_p12, %p4604_p4 }
 0x782   : > { %p4256_p9 = por %p4255_p2, %p4254_p8 }
 0x783   : > { %p4252_p5 = pneg %p4251_p7 }
 0x785   : > { %p4257_p6 = pnand %p4256_p9, %p4252_p5 }
 0x787   : > { %4260 = shalt.err (!%p4257_p6)
}
 0x788   : > { %s4431_s17 = smov 128   ;;  %s4432_s20 = smov 8  }
 0x789   : > { %3761 = dma.vmem_to_hbm [thread:$0]  (%p4604_p4), %s5501_s24, 2048, %s5498_s26, %s2724_s12, %s4431_s17, %s4431_s17, %s4432_s20  }
 0x78a   : > { %s3187_s1 = sshll.u32 %s4397_s27, 6  ;;  %s3097_s5 = sshll.u32 %s5790_s10, 7 }
 0x78b   : > { %s2758_s29 = sadd.s32 %s3187_s1, %s3097_s5  ;;  %s2761_s28 = sshll.u32 %s4697_s7, 4  ;;  %s5529_s28 = int_to_ptr.vmem [resolvable:$true] %s2761_s28 }
 0x78c   : > { %s3098_s13 = sshll.u32 %s2758_s29, 6  ;;  %s5794_s15 = sld [smem:[#allocation64_spill]] }
 0x78d   : > { %s5538_s14 = scalar_lea.sflag [#allocation12], %s369_s9  ;;  %s4261_s30 = scalar_lea.vmem %s5529_s28, 4096 }
 0x78e   : > { %p4262_p4 = scmp.ne.s32.totalorder %s5529_s28, %s4261_s30  ;;  %s4433_s27 = smov [#allocation11]  }
 0x78f   : > { %s4265_s7 = sshll.u32 %s4433_s27, 4  ;;  %s4266_s7 = int_to_ptr.vmem [resolvable:$false] %s4265_s7 }
 0x790   : > { %p4263_p1 = pnand %p4262_p4, %p4622_p11  ;;  %s4267_s10 = scalar_lea.vmem %s4266_s7, 8192 }
 0x791   : > { %p4268_p0 = scmp.lt.s32.totalorder %s5529_s28, %s4266_s7  ;;  %p4269_p12 = scmp.lt.s32.totalorder %s4267_s10, %s4261_s30 }
 0x792   : > { %s5534_s18 = scalar_lea.hbm %s5794_s15, %s3098_s13  ;;  %p4264_p3 = pneg %p4263_p1 }
 0x793   : > { %p4270_p7 = por %p4269_p12, %p4268_p0 }
 0x795   : > { %p4271_p5 = pnand %p4270_p7, %p4264_p3 }
 0x797   : > { %4274 = shalt.err (!%p4271_p5)
}
 0x798   : > { %s4275_s9 = scalar_lea.hbm %s5534_s18, 4096  ;;  %s4279_s24 = scalar_lea.hbm %s5794_s15, 16384 }
 0x799   : > { %p4276_p8 = scmp.ne.s32.totalorder %s5534_s18, %s4275_s9  ;;  %p4280_p6 = scmp.lt.s32.totalorder %s5534_s18, %s5794_s15 }
 0x79a   : > { %p4281_p4 = scmp.lt.s32.totalorder %s4279_s24, %s4275_s9 }
 0x79b   : > { %p4277_p2 = pnand %p4276_p8, %p4622_p11 }
 0x79c   : > { %p4282_p1 = por %p4281_p4, %p4280_p6 }
 0x79d   : > { %p4278_p9 = pneg %p4277_p2 }
 0x79f   : > { %p4283_p3 = pnand %p4282_p1, %p4278_p9 }
 0x7a1   : > { %4286 = shalt.err (!%p4283_p3)
}
 0x7a2   : > { %s4434_s17 = smov 64   ;;  %s4435_s20 = smov 4  }
 0x7a3   : > { %3762 = dma.vmem_to_hbm [thread:$0]  (%p4622_p11), %s5529_s28, 4096, %s5534_s18, %s5538_s14, %s4434_s17, %s4434_s17, %s4435_s20  }
 0x7a4 PF: > { %s5795_s1 = sld [smem:[#allocation22_spill]]  ;;  %p3772_p0 = scmp.ge.s32.totalorder %s4413_s6, 2 }
 0x7a6   : > { %p3766_p12 = pnand %p3772_p0, %p4611_p10 }
 0x7a8   : > { %p3767_p7 = pneg %p3766_p12 }
 0x7aa   : > { %s2776_s29 = sand.u32 1, %s5795_s1  }
 0x7ab   : > { %s2777_s13 = scalar_lea.sflag [#allocation6], %s2776_s29 }
 0x7ac   : > { %4352 = dma.done.wait (%p3767_p7), %s2777_s13, 2048  }
 0x7ad   : > { %4354 = vsyncadd (%p3767_p7), %s2777_s13, 4294965248  ;;  %s5797_s16 = sld [smem:[#allocation20_spill]]  ;;  %p3769_p5 = pnand %p3772_p0, %p4626_p13 }
 0x7af   : > { %p3770_p8 = pneg %p3769_p5 }
 0x7b3   : > { %s2785_s30 = sand.u32 1, %s5797_s16  }
 0x7b4   : > { %s2786_s11 = scalar_lea.sflag [#allocation12], %s2785_s30 }
 0x7b5   : > { %4356 = dma.done.wait (%p3770_p8), %s2786_s11, 4096  }
 0x7b6   : > { %4358 = vsyncadd (%p3770_p8), %s2786_s11, 4294963200  ;;  %s28_s6 = sadd.s32 1, %s4413_s6   ;;  %s5800_s14 = sld [smem:[#allocation21_spill]] }
 0x7b7   : > { %p5569_p11 = scmp.ge.s32.totalorder %s28_s6, 6   ;;  %s5801_s20 = sld [smem:[#allocation33_spill]] }
 0x7b8   : > { %s5802_s27 = sld [smem:[#allocation29_spill]]  ;;  %s5810_s18 = smov %s4365_s19 }
 0x7b9   : > { %s5803_s7 = sld [smem:[#allocation23_spill]]  ;;  %s5812_s21 = smov %s4377_s22 }
 0x7ba   : > { %s5804_s26 = sld [smem:[#allocation30_spill]]  ;;  %s5813_s22 = smov %s4381_s23 }
 0x7bb   : > { %s5805_s10 = sld [smem:[#allocation25_spill]]  ;;  %s5815_s24 = smov %s4389_s25 }
 0x7bc   : > { %s5806_s9 = sld [smem:[#allocation26_spill]]  ;;  %s5811_s19 = smov %s5800_s14 }
 0x7bd   : > { %s5807_s29 = sld [smem:[#allocation27_spill]] }
 0x7be   : > { %s5808_s30 = sld [smem:[#allocation28_spill]]  ;;  %s5814_s23 = smov %s5802_s27 }
 0x7bf   : > { %s5816_s25 = smov %s5803_s7  ;;  %27 = sbr.rel (!%p5569_p11) target bundleno = 19 (0x13), region = 135 }
 0x7c1   : > { %s5817_s27 = smov %s5805_s10 }
 0x7c2   : > { %s5818_s28 = smov %s5806_s9 }
 0x7c4   :  { %2791 = vsyncpa [#allocation5], 1 }
 0x7c5   :  { %2793 = vsyncpa [#allocation5 + $0x1], 1 }
 0x7c6   :  { %2794 = vsyncpa [#allocation8], 1 }
 0x7c7   :  { %2796 = vsyncpa [#allocation8 + $0x1], 1 }
 0x7c8   :  { %2797 = vsyncpa [#allocation6], 1 }
 0x7c9   :  { %2799 = vsyncpa [#allocation6 + $0x1], 1 }
 0x7ca   :  { %2800 = vsyncpa [#allocation12], 1 }
 0x7cb   :  { %2802 = vsyncpa [#allocation12 + $0x1], 1 }

</bundles_post_ra>
